<compile_context>
chip_gen: v7x
topology: tpu7x:2x2x1
jax: 0.10.0
libtpu: 0.0.40
codegen_flags: <defaults>
</compile_context>

<pallas_src>
import functools

import jax
import jax.numpy as jnp
from jax.experimental import pallas as pl
from jax.experimental.pallas import tpu as pltpu

_EPS = 1e-5
_LANE = 128


def _round_up(x, m):
    return (x + m - 1) // m * m


# ----------------------------------------------------------------------------
# Pallas kernel 1: fused eval-mode BatchNorm + ReLU (elementwise), bf16 output
# ----------------------------------------------------------------------------
def _bn_relu_kernel(x_ref, s_ref, b_ref, o_ref):
    h = jnp.maximum(x_ref[...] * s_ref[...] + b_ref[...], 0.0)
    o_ref[...] = h.astype(o_ref.dtype)


def bn_relu(x2d, scale, shift, out_dtype=jnp.bfloat16):
    """relu(x2d * scale + shift) with per-column (channel) scale/shift."""
    M, C = x2d.shape
    tm = 512 if M >= 1024 else max(16, _round_up(-(-M // 2), 16))
    tm = min(tm, _round_up(M, 16))
    Mp = _round_up(M, tm)
    if Mp != M:
        x2d = jnp.pad(x2d, ((0, Mp - M), (0, 0)))
    out = pl.pallas_call(
        _bn_relu_kernel,
        out_shape=jax.ShapeDtypeStruct((Mp, C), out_dtype),
        grid=(Mp // tm,),
        in_specs=[pl.BlockSpec((tm, C), lambda i: (i, 0)),
                  pl.BlockSpec((1, C), lambda i: (0, 0)),
                  pl.BlockSpec((1, C), lambda i: (0, 0))],
        out_specs=pl.BlockSpec((tm, C), lambda i: (i, 0)),
        compiler_params=pltpu.CompilerParams(
            dimension_semantics=("parallel",)),
    )(x2d.astype(jnp.float32),
      scale.reshape(1, C).astype(jnp.float32),
      shift.reshape(1, C).astype(jnp.float32))
    return out[:M]


# ----------------------------------------------------------------------------
# Pallas kernel 2: tiled bf16 GEMM, f32 accumulator, optional fused
#                  (relu(acc*scale+shift)) epilogue and/or residual add.
# ----------------------------------------------------------------------------
def _make_gemm_kernel(has_epilogue, has_residual):
    def kernel(*refs):
        it = iter(refs)
        a_ref = next(it)
        w_ref = next(it)
        s_ref = next(it) if has_epilogue else None
        b_ref = next(it) if has_epilogue else None
        r_ref = next(it) if has_residual else None
        o_ref = next(it)
        acc_ref = next(it)

        @pl.when(pl.program_id(2) == 0)
        def _():
            acc_ref[...] = jnp.zeros_like(acc_ref)

        acc_ref[...] += jnp.dot(a_ref[...], w_ref[...],
                                preferred_element_type=jnp.float32)

        @pl.when(pl.program_id(2) == pl.num_programs(2) - 1)
        def _():
            acc = acc_ref[...]
            if has_residual:
                acc = acc + r_ref[...].astype(jnp.float32)
            if has_epilogue:
                acc = jnp.maximum(acc * s_ref[...] + b_ref[...], 0.0)
            o_ref[...] = acc.astype(o_ref.dtype)

    return kernel


def fused_gemm(a, w, *, scale=None, shift=None, residual=None,
               out_dtype=jnp.float32, tm=None):
    """Compute (a @ w) [+ residual] [-> relu(. * scale + shift)] on TPU.

    a: (M, K), w: (K, N) with N a multiple of 128 (lane-dense output).
    Operands are fed to the MXU in bf16; accumulation is f32 in VMEM scratch.
    K is zero-padded to a multiple of 128 and tiled along the grid's last axis.
    """
    M, K = a.shape
    Kw, N = w.shape
    assert K == Kw and N % _LANE == 0
    has_epi = scale is not None
    has_res = residual is not None

    # ---- tile sizes (small-M layers are split so the M axis has >=2 grid
    #      steps -> both v7x TensorCores get work) -----------------------------
    if tm is None:
        tm = 256 if M >= 512 else max(16, _round_up(-(-M // 2), 16))
        tm = min(tm, _round_up(M, 16))
    Mp = _round_up(M, tm)
    Kp = _round_up(K, _LANE)
    tn = 256 if N % 256 == 0 else _LANE
    tk = next(t for t in (512, 384, 256, 128) if Kp % t == 0)

    # ---- bf16 MXU operands, zero-padded to tile multiples ---------------------
    a = a.astype(jnp.bfloat16)
    w = w.astype(jnp.bfloat16)
    if (Mp, Kp) != (M, K):
        a = jnp.pad(a, ((0, Mp - M), (0, Kp - K)))
    if Kp != K:
        w = jnp.pad(w, ((0, Kp - K), (0, 0)))

    in_specs = [pl.BlockSpec((tm, tk), lambda i, j, k: (i, k)),
                pl.BlockSpec((tk, tn), lambda i, j, k: (k, j))]
    ops = [a, w]
    if has_epi:
        in_specs += [pl.BlockSpec((1, tn), lambda i, j, k: (0, j)),
                     pl.BlockSpec((1, tn), lambda i, j, k: (0, j))]
        ops += [scale.reshape(1, N).astype(jnp.float32),
                shift.reshape(1, N).astype(jnp.float32)]
    if has_res:
        residual = residual.astype(jnp.float32)
        if Mp != M:
            residual = jnp.pad(residual, ((0, Mp - M), (0, 0)))
        in_specs += [pl.BlockSpec((tm, tn), lambda i, j, k: (i, j))]
        ops += [residual]

    out = pl.pallas_call(
        _make_gemm_kernel(has_epi, has_res),
        out_shape=jax.ShapeDtypeStruct((Mp, N), out_dtype),
        grid=(Mp // tm, N // tn, Kp // tk),
        in_specs=in_specs,
        out_specs=pl.BlockSpec((tm, tn), lambda i, j, k: (i, j)),
        scratch_shapes=[pltpu.VMEM((tm, tn), jnp.float32)],
        compiler_params=pltpu.CompilerParams(
            dimension_semantics=("parallel", "parallel", "arbitrary"),
            vmem_limit_bytes=32 * 1024 * 1024),
    )(*ops)
    return out[:M]


# ----------------------------------------------------------------------------
# Glue: im2col patch extraction (pure data movement, stays in JAX/XLA)
# ----------------------------------------------------------------------------
def _im2col(x_nhwc, k, stride, pad):
    # Input is already post-BN/ReLU, so zero padding here is exact.
    n, h, w, c = x_nhwc.shape
    xp = jnp.pad(x_nhwc, ((0, 0), (pad, pad), (pad, pad), (0, 0)))
    ho = (h + 2 * pad - k) // stride + 1
    wo = (w + 2 * pad - k) // stride + 1
    cols = []
    for kh in range(k):
        for kw in range(k):
            cols.append(xp[:, kh:kh + (ho - 1) * stride + 1:stride,
                           kw:kw + (wo - 1) * stride + 1:stride, :])
    p = jnp.stack(cols, axis=3)                      # (N, Ho, Wo, k*k, C)
    return p.reshape(n * ho * wo, k * k * c), ho, wo


def _fold_bn(gamma, beta, mean, var):
    scale = gamma / jnp.sqrt(var + _EPS)
    return scale, beta - mean * scale


# ----------------------------------------------------------------------------
# BasicBlock / NetworkBlock forward
# ----------------------------------------------------------------------------
def basic_block_forward(x_nhwc, params, stride, drop_rate=0.0):
    n, h, w, cin = x_nhwc.shape
    w1 = params["conv1_w"]                            # (Cout, Cin, 3, 3)
    cout = w1.shape[0]
    equal_in_out = (cin == cout)
    if equal_in_out:
        assert stride == 1, "identity shortcut requires stride == 1"
    cp = _round_up(cout, _LANE)                       # lane-padded output channels

    s1, b1 = _fold_bn(params["bn1_gamma"], params["bn1_beta"],
                      params["bn1_mean"], params["bn1_var"])
    s2, b2 = _fold_bn(params["bn2_gamma"], params["bn2_beta"],
                      params["bn2_mean"], params["bn2_var"])

    # a = relu(bn1(x)), computed BEFORE spatial padding (exact conv border), bf16.
    a = bn_relu(x_nhwc.reshape(n * h * w, cin), s1, b1).reshape(n, h, w, cin)

    # ---- conv1 with fused bn2+relu epilogue: y1 = relu(bn2(conv1(a))) ---------
    p1, ho, wo = _im2col(a, 3, stride, 1)             # (M1, 9*Cin) bf16
    w1f = jnp.transpose(w1, (2, 3, 1, 0)).reshape(9 * cin, cout)
    w1f = jnp.pad(w1f, ((0, 0), (0, cp - cout)))
    s2p = jnp.pad(s2, (0, cp - cout))
    b2p = jnp.pad(b2, (0, cp - cout))
    y1 = fused_gemm(p1, w1f, scale=s2p, shift=b2p, out_dtype=jnp.bfloat16)
    # TODO(synk): F.dropout not implemented here (drop_rate == 0.0, eval mode).
    y1 = y1.reshape(n, ho, wo, cp)                    # channel-padded, already ReLU'd

    # ---- residual branch ------------------------------------------------------
    m1 = n * ho * wo
    if equal_in_out:
        res = jnp.pad(x_nhwc.reshape(m1, cin), ((0, 0), (0, cp - cin)))
    else:
        wsf = jnp.transpose(params["shortcut_w"], (2, 3, 1, 0)).reshape(cin, cout)
        wsf = jnp.pad(wsf, ((0, 0), (0, cp - cout)))
        a_s = a[:, ::stride, ::stride, :].reshape(m1, cin)   # reuse activated `a`
        res = fused_gemm(a_s, wsf, out_dtype=jnp.float32)

    # ---- conv2 with fused residual add -----------------------------------------
    p2, _, _ = _im2col(y1, 3, 1, 1)                   # (M1, 9*cp) bf16
    w2f = jnp.transpose(params["conv2_w"], (2, 3, 1, 0))       # (3,3,Cout,Cout)
    w2f = jnp.pad(w2f, ((0, 0), (0, 0), (0, cp - cout), (0, cp - cout)))
    w2f = w2f.reshape(9 * cp, cp)
    out = fused_gemm(p2, w2f, residual=res, out_dtype=jnp.float32)
    return out[:, :cout].reshape(n, ho, wo, cout)


def network_block_forward(x_nchw, block_params, stride, drop_rate=0.0):
    """NetworkBlock.forward.  Input/output are NCHW (PyTorch convention)."""
    x = jnp.transpose(x_nchw, (0, 2, 3, 1))           # -> NHWC for the kernels
    for i, params in enumerate(block_params):
        s = stride if i == 0 else 1
        x = basic_block_forward(x, params, s, drop_rate)
    return jnp.transpose(x, (0, 3, 1, 2))             # -> NCHW


# ----------------------------------------------------------------------------
# Deterministic parameter init (synthetic; eval-mode BN with running stats)
# ----------------------------------------------------------------------------
def init_basic_block_params(key, in_planes, out_planes):
    ks = jax.random.split(key, 8)
    p = {
        "bn1_gamma": 1.0 + 0.1 * jax.random.normal(ks[0], (in_planes,), jnp.float32),
        "bn1_beta": 0.1 * jax.random.normal(ks[1], (in_planes,), jnp.float32),
        "bn1_mean": 0.1 * jax.random.normal(ks[2], (in_planes,), jnp.float32),
        "bn1_var": 1.0 + 0.1 * jnp.abs(jax.random.normal(ks[3], (in_planes,), jnp.float32)),
        "conv1_w": jax.random.normal(ks[4], (out_planes, in_planes, 3, 3), jnp.float32)
                   * (2.0 / (9 * out_planes)) ** 0.5,
        "bn2_gamma": 1.0 + 0.1 * jax.random.normal(ks[5], (out_planes,), jnp.float32),
        "bn2_beta": 0.1 * jax.random.normal(ks[6], (out_planes,), jnp.float32),
        "bn2_mean": jnp.zeros((out_planes,), jnp.float32),
        "bn2_var": jnp.ones((out_planes,), jnp.float32),
        "conv2_w": jax.random.normal(ks[7], (out_planes, out_planes, 3, 3), jnp.float32)
                   * (2.0 / (9 * out_planes)) ** 0.5,
    }
    if in_planes != out_planes:
        p["shortcut_w"] = jax.random.normal(
            jax.random.fold_in(key, 99), (out_planes, in_planes, 1, 1), jnp.float32
        ) * (2.0 / out_planes) ** 0.5
    return p


def init_network_block_params(key, nb_layers, in_planes, out_planes):
    params = []
    for i in range(int(nb_layers)):
        cin = in_planes if i == 0 else out_planes
        params.append(init_basic_block_params(jax.random.fold_in(key, i), cin, out_planes))
    return params


# ----------------------------------------------------------------------------
# Pure-JAX reference (lax.conv) mirroring the kernel's precision strategy
# (bf16 MXU operands, f32 accumulation) so a tight tolerance still holds.
# ----------------------------------------------------------------------------
def _ref_basic_block(x, params, stride):
    def conv(v, wt, s, p):
        return jax.lax.conv_general_dilated(
            v.astype(jnp.bfloat16), wt.astype(jnp.bfloat16), (s, s),
            [(p, p), (p, p)], dimension_numbers=("NCHW", "OIHW", "NCHW"),
            preferred_element_type=jnp.float32)

    def bn(v, g, b, m, var):
        sc = g / jnp.sqrt(var + _EPS)
        sh = b - m * sc
        return v * sc[None, :, None, None] + sh[None, :, None, None]

    cin, cout = x.shape[1], params["conv1_w"].shape[0]
    equal = cin == cout
    a = jax.nn.relu(bn(x, params["bn1_gamma"], params["bn1_beta"],
                       params["bn1_mean"], params["bn1_var"]))
    a = a.astype(jnp.bfloat16).astype(jnp.float32)
    y = conv(a, params["conv1_w"], stride, 1)
    y = jax.nn.relu(bn(y, params["bn2_gamma"], params["bn2_beta"],
                       params["bn2_mean"], params["bn2_var"]))
    y = y.astype(jnp.bfloat16).astype(jnp.float32)
    out = conv(y, params["conv2_w"], 1, 1)
    short = x if equal else conv(a, params["shortcut_w"], stride, 0)
    return short + out


def _ref_network_block(x, block_params, stride):
    for i, p in enumerate(block_params):
        x = _ref_basic_block(x, p, stride if i == 0 else 1)
    return x


# ----------------------------------------------------------------------------
if __name__ == "__main__":
    # NetworkBlock(nb_layers=2, in_planes=4, out_planes=8, block=BasicBlock,
    #              stride=2, dropRate=0.0)
    nb_layers, in_planes, out_planes, stride = 2, 4, 8, 2

    key = jax.random.PRNGKey(0)
    kx, kp = jax.random.split(key)
    x = jax.random.normal(kx, (2, in_planes, 16, 16), jnp.float32)   # NCHW

    params = init_network_block_params(kp, nb_layers, in_planes, out_planes)

    fwd = jax.jit(functools.partial(network_block_forward, stride=stride))
    out = jax.block_until_ready(fwd(x, params))

    ref = _ref_network_block(x, params, stride)
    assert out.shape == ref.shape == (2, out_planes, 8, 8), out.shape
    max_err = float(jnp.max(jnp.abs(out - ref)))
    assert jnp.allclose(out, ref, atol=1e-2, rtol=1e-2), max_err

    print("KERNEL_OK")
</pallas_src>

<mosaic_0001>
module attributes {stable_mosaic.version = 11 : i64} {
  func.func @_bn_relu_kernel(%arg0: i32, %arg1: memref<256x4xf32, #tpu.memory_space<vmem>>, %arg2: memref<1x4xf32, #tpu.memory_space<vmem>>, %arg3: memref<1x4xf32, #tpu.memory_space<vmem>>, %arg4: memref<256x4xbf16, #tpu.memory_space<vmem>>) attributes {dimension_semantics = [#tpu.dimension_semantics<parallel>], iteration_bounds = array<i64: 2>, scalar_prefetch = 0 : i64, scratch_operands = 0 : i64, tpu.core_type = #tpu.core_type<tc>, window_params = [{transform_indices = @transform_0, window_bounds = array<i64: 256, 4>}, {pipeline_mode = #tpu.pipeline_mode<synchronous>, transform_indices = @transform_1, window_bounds = array<i64: 1, 4>}, {pipeline_mode = #tpu.pipeline_mode<synchronous>, transform_indices = @transform_2, window_bounds = array<i64: 1, 4>}, {transform_indices = @transform_3, window_bounds = array<i64: 256, 4>}]} {
    %c0 = arith.constant 0 : index
    %c0_0 = arith.constant 0 : index
    %0 = vector.load %arg1[%c0, %c0_0] : memref<256x4xf32, #tpu.memory_space<vmem>>, vector<256x4xf32>
    %c0_1 = arith.constant 0 : index
    %c0_2 = arith.constant 0 : index
    %1 = vector.load %arg2[%c0_1, %c0_2] : memref<1x4xf32, #tpu.memory_space<vmem>>, vector<1x4xf32>
    %2 = vector.broadcast %1 : vector<1x4xf32> to vector<256x4xf32>
    %3 = arith.mulf %0, %2 : vector<256x4xf32>
    %c0_3 = arith.constant 0 : index
    %c0_4 = arith.constant 0 : index
    %4 = vector.load %arg3[%c0_3, %c0_4] : memref<1x4xf32, #tpu.memory_space<vmem>>, vector<1x4xf32>
    %5 = vector.broadcast %4 : vector<1x4xf32> to vector<256x4xf32>
    %6 = arith.addf %3, %5 : vector<256x4xf32>
    %cst = arith.constant 0.000000e+00 : f32
    %7 = vector.broadcast %cst : f32 to vector<256x4xf32>
    %8 = arith.maximumf %6, %7 : vector<256x4xf32>
    %9 = arith.truncf %8 : vector<256x4xf32> to vector<256x4xbf16>
    %c0_5 = arith.constant 0 : index
    %c0_6 = arith.constant 0 : index
    %10 = vector.load %arg4[%c0_5, %c0_6] : memref<256x4xbf16, #tpu.memory_space<vmem>>, vector<256x4xbf16>
    tpu.vector_store %arg4[%c0_5, %c0_6], %9 {strides = array<i32>} : memref<256x4xbf16, #tpu.memory_space<vmem>>, vector<256x4xbf16>,
    return
  }
  func.func @transform_0(%arg0: i32) -> (i32, i32) {
    %c0_i32 = arith.constant 0 : i32
    %c0_i32_0 = arith.constant 0 : i32
    return %arg0, %c0_i32 : i32, i32
  }
  func.func @transform_1(%arg0: i32) -> (i32, i32) {
    %c0_i32 = arith.constant 0 : i32
    %c0_i32_0 = arith.constant 0 : i32
    %c0_i32_1 = arith.constant 0 : i32
    return %c0_i32, %c0_i32_0 : i32, i32
  }
  func.func @transform_2(%arg0: i32) -> (i32, i32) {
    %c0_i32 = arith.constant 0 : i32
    %c0_i32_0 = arith.constant 0 : i32
    %c0_i32_1 = arith.constant 0 : i32
    return %c0_i32, %c0_i32_0 : i32, i32
  }
  func.func @transform_3(%arg0: i32) -> (i32, i32) {
    %c0_i32 = arith.constant 0 : i32
    %c0_i32_0 = arith.constant 0 : i32
    return %arg0, %c0_i32 : i32, i32
  }
}

module attributes {stable_mosaic.version = 11 : i64} {
  func.func @kernel(%arg0: i32, %arg1: i32, %arg2: i32, %arg3: memref<64x128xbf16, #tpu.memory_space<vmem>>, %arg4: memref<128x128xbf16, #tpu.memory_space<vmem>>, %arg5: memref<1x128xf32, #tpu.memory_space<vmem>>, %arg6: memref<1x128xf32, #tpu.memory_space<vmem>>, %arg7: memref<64x128xbf16, #tpu.memory_space<vmem>>, %arg8: memref<64x128xf32, #tpu.memory_space<vmem>>) attributes {dimension_semantics = [#tpu.dimension_semantics<parallel>, #tpu.dimension_semantics<parallel>, #tpu.dimension_semantics<arbitrary>], iteration_bounds = array<i64: 2, 1, 1>, scalar_prefetch = 0 : i64, scratch_operands = 1 : i64, tpu.core_type = #tpu.core_type<tc>, window_params = [{transform_indices = @transform_0, window_bounds = array<i64: 64, 128>}, {transform_indices = @transform_1, window_bounds = array<i64: 128, 128>}, {transform_indices = @transform_2, window_bounds = array<i64: 1, 128>}, {transform_indices = @transform_3, window_bounds = array<i64: 1, 128>}, {transform_indices = @transform_4, window_bounds = array<i64: 64, 128>}]} {
    %c0_i32 = arith.constant 0 : i32
    %0 = arith.cmpi eq, %arg2, %c0_i32 : i32
    %1 = arith.extui %0 : i1 to i32
    %c0_i32_0 = arith.constant 0 : i32
    %2 = arith.cmpi ne, %1, %c0_i32_0 : i32
    scf.if %2 {
      %cst_10 = arith.constant 0.000000e+00 : f32
      %12 = vector.broadcast %cst_10 : f32 to vector<64x128xf32>
      %c0_11 = arith.constant 0 : index
      %c0_12 = arith.constant 0 : index
      %13 = vector.load %arg8[%c0_11, %c0_12] : memref<64x128xf32, #tpu.memory_space<vmem>>, vector<64x128xf32>
      tpu.vector_store %arg8[%c0_11, %c0_12], %12 {strides = array<i32>} : memref<64x128xf32, #tpu.memory_space<vmem>>, vector<64x128xf32>,
    } else {
    }
    %c0 = arith.constant 0 : index
    %c0_1 = arith.constant 0 : index
    %3 = vector.load %arg8[%c0, %c0_1] : memref<64x128xf32, #tpu.memory_space<vmem>>, vector<64x128xf32>
    %c0_2 = arith.constant 0 : index
    %c0_3 = arith.constant 0 : index
    %4 = vector.load %arg3[%c0_2, %c0_3] : memref<64x128xbf16, #tpu.memory_space<vmem>>, vector<64x128xbf16>
    %c0_4 = arith.constant 0 : index
    %c0_5 = arith.constant 0 : index
    %5 = vector.load %arg4[%c0_4, %c0_5] : memref<128x128xbf16, #tpu.memory_space<vmem>>, vector<128x128xbf16>
    %cst = arith.constant dense<0.000000e+00> : vector<64x128xf32>
    %6 = tpu.matmul %4, %5, %cst {dimension_numbers = #tpu.dot_dimension_numbers<[1], [0], [0], [1], [0, 0, 1, 1], [], []>} : vector<64x128xbf16>, vector<128x128xbf16>, vector<64x128xf32> -> vector<64x128xf32>
    %7 = arith.addf %3, %6 : vector<64x128xf32>
    %c0_6 = arith.constant 0 : index
    %c0_7 = arith.constant 0 : index
    %8 = vector.load %arg8[%c0_6, %c0_7] : memref<64x128xf32, #tpu.memory_space<vmem>>, vector<64x128xf32>
    tpu.vector_store %arg8[%c0_6, %c0_7], %7 {strides = array<i32>} : memref<64x128xf32, #tpu.memory_space<vmem>>, vector<64x128xf32>,
    %c0_i32_8 = arith.constant 0 : i32
    %9 = arith.cmpi eq, %arg2, %c0_i32_8 : i32
    %10 = arith.extui %9 : i1 to i32
    %c0_i32_9 = arith.constant 0 : i32
    %11 = arith.cmpi ne, %10, %c0_i32_9 : i32
    scf.if %11 {
      %c0_10 = arith.constant 0 : index
      %c0_11 = arith.constant 0 : index
      %12 = vector.load %arg8[%c0_10, %c0_11] : memref<64x128xf32, #tpu.memory_space<vmem>>, vector<64x128xf32>
      %c0_12 = arith.constant 0 : index
      %c0_13 = arith.constant 0 : index
      %13 = vector.load %arg5[%c0_12, %c0_13] : memref<1x128xf32, #tpu.memory_space<vmem>>, vector<1x128xf32>
      %14 = vector.broadcast %13 : vector<1x128xf32> to vector<64x128xf32>
      %15 = arith.mulf %12, %14 : vector<64x128xf32>
      %c0_14 = arith.constant 0 : index
      %c0_15 = arith.constant 0 : index
      %16 = vector.load %arg6[%c0_14, %c0_15] : memref<1x128xf32, #tpu.memory_space<vmem>>, vector<1x128xf32>
      %17 = vector.broadcast %16 : vector<1x128xf32> to vector<64x128xf32>
      %18 = arith.addf %15, %17 : vector<64x128xf32>
      %cst_16 = arith.constant 0.000000e+00 : f32
      %19 = vector.broadcast %cst_16 : f32 to vector<64x128xf32>
      %20 = arith.maximumf %18, %19 : vector<64x128xf32>
      %21 = arith.truncf %20 : vector<64x128xf32> to vector<64x128xbf16>
      %c0_17 = arith.constant 0 : index
      %c0_18 = arith.constant 0 : index
      %22 = vector.load %arg7[%c0_17, %c0_18] : memref<64x128xbf16, #tpu.memory_space<vmem>>, vector<64x128xbf16>
      tpu.vector_store %arg7[%c0_17, %c0_18], %21 {strides = array<i32>} : memref<64x128xbf16, #tpu.memory_space<vmem>>, vector<64x128xbf16>,
    } else {
    }
    return
  }
  func.func @transform_0(%arg0: i32, %arg1: i32, %arg2: i32) -> (i32, i32) {
    %c0_i32 = arith.constant 0 : i32
    return %arg0, %arg2 : i32, i32
  }
  func.func @transform_1(%arg0: i32, %arg1: i32, %arg2: i32) -> (i32, i32) {
    %c0_i32 = arith.constant 0 : i32
    return %arg2, %arg1 : i32, i32
  }
  func.func @transform_2(%arg0: i32, %arg1: i32, %arg2: i32) -> (i32, i32) {
    %c0_i32 = arith.constant 0 : i32
    %c0_i32_0 = arith.constant 0 : i32
    return %c0_i32, %arg1 : i32, i32
  }
  func.func @transform_3(%arg0: i32, %arg1: i32, %arg2: i32) -> (i32, i32) {
    %c0_i32 = arith.constant 0 : i32
    %c0_i32_0 = arith.constant 0 : i32
    return %c0_i32, %arg1 : i32, i32
  }
  func.func @transform_4(%arg0: i32, %arg1: i32, %arg2: i32) -> (i32, i32) {
    %c0_i32 = arith.constant 0 : i32
    return %arg0, %arg1 : i32, i32
  }
}

module attributes {stable_mosaic.version = 11 : i64} {
  func.func @kernel(%arg0: i32, %arg1: i32, %arg2: i32, %arg3: memref<64x128xbf16, #tpu.memory_space<vmem>>, %arg4: memref<128x128xbf16, #tpu.memory_space<vmem>>, %arg5: memref<64x128xf32, #tpu.memory_space<vmem>>, %arg6: memref<64x128xf32, #tpu.memory_space<vmem>>) attributes {dimension_semantics = [#tpu.dimension_semantics<parallel>, #tpu.dimension_semantics<parallel>, #tpu.dimension_semantics<arbitrary>], iteration_bounds = array<i64: 2, 1, 1>, scalar_prefetch = 0 : i64, scratch_operands = 1 : i64, tpu.core_type = #tpu.core_type<tc>, window_params = [{transform_indices = @transform_0, window_bounds = array<i64: 64, 128>}, {transform_indices = @transform_1, window_bounds = array<i64: 128, 128>}, {transform_indices = @transform_2, window_bounds = array<i64: 64, 128>}]} {
    %c0_i32 = arith.constant 0 : i32
    %0 = arith.cmpi eq, %arg2, %c0_i32 : i32
    %1 = arith.extui %0 : i1 to i32
    %c0_i32_0 = arith.constant 0 : i32
    %2 = arith.cmpi ne, %1, %c0_i32_0 : i32
    scf.if %2 {
      %cst_10 = arith.constant 0.000000e+00 : f32
      %12 = vector.broadcast %cst_10 : f32 to vector<64x128xf32>
      %c0_11 = arith.constant 0 : index
      %c0_12 = arith.constant 0 : index
      %13 = vector.load %arg6[%c0_11, %c0_12] : memref<64x128xf32, #tpu.memory_space<vmem>>, vector<64x128xf32>
      tpu.vector_store %arg6[%c0_11, %c0_12], %12 {strides = array<i32>} : memref<64x128xf32, #tpu.memory_space<vmem>>, vector<64x128xf32>,
    } else {
    }
    %c0 = arith.constant 0 : index
    %c0_1 = arith.constant 0 : index
    %3 = vector.load %arg6[%c0, %c0_1] : memref<64x128xf32, #tpu.memory_space<vmem>>, vector<64x128xf32>
    %c0_2 = arith.constant 0 : index
    %c0_3 = arith.constant 0 : index
    %4 = vector.load %arg3[%c0_2, %c0_3] : memref<64x128xbf16, #tpu.memory_space<vmem>>, vector<64x128xbf16>
    %c0_4 = arith.constant 0 : index
    %c0_5 = arith.constant 0 : index
    %5 = vector.load %arg4[%c0_4, %c0_5] : memref<128x128xbf16, #tpu.memory_space<vmem>>, vector<128x128xbf16>
    %cst = arith.constant dense<0.000000e+00> : vector<64x128xf32>
    %6 = tpu.matmul %4, %5, %cst {dimension_numbers = #tpu.dot_dimension_numbers<[1], [0], [0], [1], [0, 0, 1, 1], [], []>} : vector<64x128xbf16>, vector<128x128xbf16>, vector<64x128xf32> -> vector<64x128xf32>
    %7 = arith.addf %3, %6 : vector<64x128xf32>
    %c0_6 = arith.constant 0 : index
    %c0_7 = arith.constant 0 : index
    %8 = vector.load %arg6[%c0_6, %c0_7] : memref<64x128xf32, #tpu.memory_space<vmem>>, vector<64x128xf32>
    tpu.vector_store %arg6[%c0_6, %c0_7], %7 {strides = array<i32>} : memref<64x128xf32, #tpu.memory_space<vmem>>, vector<64x128xf32>,
    %c0_i32_8 = arith.constant 0 : i32
    %9 = arith.cmpi eq, %arg2, %c0_i32_8 : i32
    %10 = arith.extui %9 : i1 to i32
    %c0_i32_9 = arith.constant 0 : i32
    %11 = arith.cmpi ne, %10, %c0_i32_9 : i32
    scf.if %11 {
      %c0_10 = arith.constant 0 : index
      %c0_11 = arith.constant 0 : index
      %12 = vector.load %arg6[%c0_10, %c0_11] : memref<64x128xf32, #tpu.memory_space<vmem>>, vector<64x128xf32>
      %c0_12 = arith.constant 0 : index
      %c0_13 = arith.constant 0 : index
      %13 = vector.load %arg5[%c0_12, %c0_13] : memref<64x128xf32, #tpu.memory_space<vmem>>, vector<64x128xf32>
      tpu.vector_store %arg5[%c0_12, %c0_13], %12 {strides = array<i32>} : memref<64x128xf32, #tpu.memory_space<vmem>>, vector<64x128xf32>,
    } else {
    }
    return
  }
  func.func @transform_0(%arg0: i32, %arg1: i32, %arg2: i32) -> (i32, i32) {
    %c0_i32 = arith.constant 0 : i32
    return %arg0, %arg2 : i32, i32
  }
  func.func @transform_1(%arg0: i32, %arg1: i32, %arg2: i32) -> (i32, i32) {
    %c0_i32 = arith.constant 0 : i32
    return %arg2, %arg1 : i32, i32
  }
  func.func @transform_2(%arg0: i32, %arg1: i32, %arg2: i32) -> (i32, i32) {
    %c0_i32 = arith.constant 0 : i32
    return %arg0, %arg1 : i32, i32
  }
}

module attributes {stable_mosaic.version = 11 : i64} {
  func.func @kernel(%arg0: i32, %arg1: i32, %arg2: i32, %arg3: memref<64x384xbf16, #tpu.memory_space<vmem>>, %arg4: memref<384x128xbf16, #tpu.memory_space<vmem>>, %arg5: memref<64x128xf32, #tpu.memory_space<vmem>>, %arg6: memref<64x128xf32, #tpu.memory_space<vmem>>, %arg7: memref<64x128xf32, #tpu.memory_space<vmem>>) attributes {dimension_semantics = [#tpu.dimension_semantics<parallel>, #tpu.dimension_semantics<parallel>, #tpu.dimension_semantics<arbitrary>], iteration_bounds = array<i64: 2, 1, 3>, scalar_prefetch = 0 : i64, scratch_operands = 1 : i64, tpu.core_type = #tpu.core_type<tc>, window_params = [{transform_indices = @transform_0, window_bounds = array<i64: 64, 384>}, {transform_indices = @transform_1, window_bounds = array<i64: 384, 128>}, {transform_indices = @transform_2, window_bounds = array<i64: 64, 128>}, {transform_indices = @transform_3, window_bounds = array<i64: 64, 128>}]} {
    %c0_i32 = arith.constant 0 : i32
    %0 = arith.cmpi eq, %arg2, %c0_i32 : i32
    %1 = arith.extui %0 : i1 to i32
    %c0_i32_0 = arith.constant 0 : i32
    %2 = arith.cmpi ne, %1, %c0_i32_0 : i32
    scf.if %2 {
      %cst_9 = arith.constant 0.000000e+00 : f32
      %12 = vector.broadcast %cst_9 : f32 to vector<64x128xf32>
      %c0_10 = arith.constant 0 : index
      %c0_11 = arith.constant 0 : index
      %13 = vector.load %arg7[%c0_10, %c0_11] : memref<64x128xf32, #tpu.memory_space<vmem>>, vector<64x128xf32>
      tpu.vector_store %arg7[%c0_10, %c0_11], %12 {strides = array<i32>} : memref<64x128xf32, #tpu.memory_space<vmem>>, vector<64x128xf32>,
    } else {
    }
    %c0 = arith.constant 0 : index
    %c0_1 = arith.constant 0 : index
    %3 = vector.load %arg7[%c0, %c0_1] : memref<64x128xf32, #tpu.memory_space<vmem>>, vector<64x128xf32>
    %c0_2 = arith.constant 0 : index
    %c0_3 = arith.constant 0 : index
    %4 = vector.load %arg3[%c0_2, %c0_3] : memref<64x384xbf16, #tpu.memory_space<vmem>>, vector<64x384xbf16>
    %c0_4 = arith.constant 0 : index
    %c0_5 = arith.constant 0 : index
    %5 = vector.load %arg4[%c0_4, %c0_5] : memref<384x128xbf16, #tpu.memory_space<vmem>>, vector<384x128xbf16>
    %cst = arith.constant dense<0.000000e+00> : vector<64x128xf32>
    %6 = tpu.matmul %4, %5, %cst {dimension_numbers = #tpu.dot_dimension_numbers<[1], [0], [0], [1], [0, 0, 1, 1], [], []>} : vector<64x384xbf16>, vector<384x128xbf16>, vector<64x128xf32> -> vector<64x128xf32>
    %7 = arith.addf %3, %6 : vector<64x128xf32>
    %c0_6 = arith.constant 0 : index
    %c0_7 = arith.constant 0 : index
    %8 = vector.load %arg7[%c0_6, %c0_7] : memref<64x128xf32, #tpu.memory_space<vmem>>, vector<64x128xf32>
    tpu.vector_store %arg7[%c0_6, %c0_7], %7 {strides = array<i32>} : memref<64x128xf32, #tpu.memory_space<vmem>>, vector<64x128xf32>,
    %c2_i32 = arith.constant 2 : i32
    %9 = arith.cmpi eq, %arg2, %c2_i32 : i32
    %10 = arith.extui %9 : i1 to i32
    %c0_i32_8 = arith.constant 0 : i32
    %11 = arith.cmpi ne, %10, %c0_i32_8 : i32
    scf.if %11 {
      %c0_9 = arith.constant 0 : index
      %c0_10 = arith.constant 0 : index
      %12 = vector.load %arg7[%c0_9, %c0_10] : memref<64x128xf32, #tpu.memory_space<vmem>>, vector<64x128xf32>
      %c0_11 = arith.constant 0 : index
      %c0_12 = arith.constant 0 : index
      %13 = vector.load %arg5[%c0_11, %c0_12] : memref<64x128xf32, #tpu.memory_space<vmem>>, vector<64x128xf32>
      %14 = arith.addf %12, %13 : vector<64x128xf32>
      %c0_13 = arith.constant 0 : index
      %c0_14 = arith.constant 0 : index
      %15 = vector.load %arg6[%c0_13, %c0_14] : memref<64x128xf32, #tpu.memory_space<vmem>>, vector<64x128xf32>
      tpu.vector_store %arg6[%c0_13, %c0_14], %14 {strides = array<i32>} : memref<64x128xf32, #tpu.memory_space<vmem>>, vector<64x128xf32>,
    } else {
    }
    return
  }
  func.func @transform_0(%arg0: i32, %arg1: i32, %arg2: i32) -> (i32, i32) {
    %c0_i32 = arith.constant 0 : i32
    return %arg0, %arg2 : i32, i32
  }
  func.func @transform_1(%arg0: i32, %arg1: i32, %arg2: i32) -> (i32, i32) {
    %c0_i32 = arith.constant 0 : i32
    return %arg2, %arg1 : i32, i32
  }
  func.func @transform_2(%arg0: i32, %arg1: i32, %arg2: i32) -> (i32, i32) {
    %c0_i32 = arith.constant 0 : i32
    return %arg0, %arg1 : i32, i32
  }
  func.func @transform_3(%arg0: i32, %arg1: i32, %arg2: i32) -> (i32, i32) {
    %c0_i32 = arith.constant 0 : i32
    return %arg0, %arg1 : i32, i32
  }
}

module attributes {stable_mosaic.version = 11 : i64} {
  func.func @_bn_relu_kernel(%arg0: i32, %arg1: memref<64x8xf32, #tpu.memory_space<vmem>>, %arg2: memref<1x8xf32, #tpu.memory_space<vmem>>, %arg3: memref<1x8xf32, #tpu.memory_space<vmem>>, %arg4: memref<64x8xbf16, #tpu.memory_space<vmem>>) attributes {dimension_semantics = [#tpu.dimension_semantics<parallel>], iteration_bounds = array<i64: 2>, scalar_prefetch = 0 : i64, scratch_operands = 0 : i64, tpu.core_type = #tpu.core_type<tc>, window_params = [{transform_indices = @transform_0, window_bounds = array<i64: 64, 8>}, {pipeline_mode = #tpu.pipeline_mode<synchronous>, transform_indices = @transform_1, window_bounds = array<i64: 1, 8>}, {pipeline_mode = #tpu.pipeline_mode<synchronous>, transform_indices = @transform_2, window_bounds = array<i64: 1, 8>}, {transform_indices = @transform_3, window_bounds = array<i64: 64, 8>}]} {
    %c0 = arith.constant 0 : index
    %c0_0 = arith.constant 0 : index
    %0 = vector.load %arg1[%c0, %c0_0] : memref<64x8xf32, #tpu.memory_space<vmem>>, vector<64x8xf32>
    %c0_1 = arith.constant 0 : index
    %c0_2 = arith.constant 0 : index
    %1 = vector.load %arg2[%c0_1, %c0_2] : memref<1x8xf32, #tpu.memory_space<vmem>>, vector<1x8xf32>
    %2 = vector.broadcast %1 : vector<1x8xf32> to vector<64x8xf32>
    %3 = arith.mulf %0, %2 : vector<64x8xf32>
    %c0_3 = arith.constant 0 : index
    %c0_4 = arith.constant 0 : index
    %4 = vector.load %arg3[%c0_3, %c0_4] : memref<1x8xf32, #tpu.memory_space<vmem>>, vector<1x8xf32>
    %5 = vector.broadcast %4 : vector<1x8xf32> to vector<64x8xf32>
    %6 = arith.addf %3, %5 : vector<64x8xf32>
    %cst = arith.constant 0.000000e+00 : f32
    %7 = vector.broadcast %cst : f32 to vector<64x8xf32>
    %8 = arith.maximumf %6, %7 : vector<64x8xf32>
    %9 = arith.truncf %8 : vector<64x8xf32> to vector<64x8xbf16>
    %c0_5 = arith.constant 0 : index
    %c0_6 = arith.constant 0 : index
    %10 = vector.load %arg4[%c0_5, %c0_6] : memref<64x8xbf16, #tpu.memory_space<vmem>>, vector<64x8xbf16>
    tpu.vector_store %arg4[%c0_5, %c0_6], %9 {strides = array<i32>} : memref<64x8xbf16, #tpu.memory_space<vmem>>, vector<64x8xbf16>,
    return
  }
  func.func @transform_0(%arg0: i32) -> (i32, i32) {
    %c0_i32 = arith.constant 0 : i32
    %c0_i32_0 = arith.constant 0 : i32
    return %arg0, %c0_i32 : i32, i32
  }
  func.func @transform_1(%arg0: i32) -> (i32, i32) {
    %c0_i32 = arith.constant 0 : i32
    %c0_i32_0 = arith.constant 0 : i32
    %c0_i32_1 = arith.constant 0 : i32
    return %c0_i32, %c0_i32_0 : i32, i32
  }
  func.func @transform_2(%arg0: i32) -> (i32, i32) {
    %c0_i32 = arith.constant 0 : i32
    %c0_i32_0 = arith.constant 0 : i32
    %c0_i32_1 = arith.constant 0 : i32
    return %c0_i32, %c0_i32_0 : i32, i32
  }
  func.func @transform_3(%arg0: i32) -> (i32, i32) {
    %c0_i32 = arith.constant 0 : i32
    %c0_i32_0 = arith.constant 0 : i32
    return %arg0, %c0_i32 : i32, i32
  }
}

</mosaic_0001>

<bundles_post_ra>
// kernel: network_block_forward.7
= control target key start
LH: loop header
LB: loop body
LE: loop exit
PB: predicated region body
PF: predicated region fallthrough
CT: control target
= control target key end

     0   :  { %s646_s12 = smov 0   ;;  %s841_s0 = inlined_call_operand.vmem [shape: f32[512,4], index: 0, kind: input, shape index: {}]   ;;  %s842_s1 = inlined_call_operand.vmem [shape: f32[1,4], index: 1, kind: input, shape index: {}]   ;;  %s843_s2 = inlined_call_operand.vmem [shape: f32[1,4], index: 2, kind: input, shape index: {}]   ;;  %s844_s3 = inlined_call_operand.vmem [shape: bf16[512,4], index: 3, kind: output, shape index: {}]  }
   0x1 LB: > { %s533_s13 = sadd.s32 4294967295, %s624_s12   ;;  %p537_p0 = scmp.ge.s32.totalorder %s624_s12, 1  ;;  %s624_s12 = sphi %s646_s12, %s13_s12  }
   0x2   : > { %p138_p1 = scmp.lt.s32.totalorder %s624_s12, 3 }
   0x4   : > { %p139_p2 = pnand %p537_p0, %p138_p1 }
   0x5   : > { %s538_s14 = sshll.u32 (!%p139_p2), %s533_s13, 5  ;;  %v660_v0 = vld [vmem:[%s842_s1] ss:$0 sm:$0xff] (!%p139_p2)  ;;  %vm444_vm0 = vcmask (!%p139_p2), 27648  }
   0x6   : > { %142 = sbr.rel (%p139_p2) target bundleno = 56 (0x38), region = 32  ;;  %p163_p3 = scmp.lt.s32.totalorder (!%p139_p2), %s538_s14, 63  ;;  %v670_v1 = vld [vmem:[%s843_s2] ss:$0 sm:$0xff] (!%p139_p2) }
   0xd   : > { %s846_s14 = smov (!%p163_p3, %s538_s14), 63 }
   0xe   : > { %s539_s15 = sshll.u32 %s846_s14, 3  ;;  %s541_s23 = sshll.u32 %s846_s14, 2 }
   0xf   : > { %s665_s20 = scalar_lea.vmem %s841_s0, %s539_s15  ;;  %s699_s26 = scalar_lea.vmem %s844_s3, %s541_s23 }
  0x10   : > { %v174_v2 = vld [vmem:[%s665_s20] sm:$0xff]  ;;  %v175_v3 = vld [vmem:[%s665_s20 + $0x8] sm:$0xff]  ;;  %v176_v4 = vld [vmem:[%s665_s20 + $0x10] sm:$0xff] }
  0x11   : > { %v213_v5 = vmul.f32 %v660_v0, %v174_v2  ;;  %v214_v6 = vmul.f32 %v660_v0, %v175_v3  ;;  %v215_v7 = vmul.f32 %v660_v0, %v176_v4  ;;  %v177_v8 = vld [vmem:[%s665_s20 + $0x18] sm:$0xff]  ;;  %v178_v9 = vld [vmem:[%s665_s20 + $0x20] sm:$0xff]  ;;  %v179_v10 = vld [vmem:[%s665_s20 + $0x28] sm:$0xff] }
  0x12   : > { %v216_v11 = vmul.f32 %v660_v0, %v177_v8  ;;  %v217_v12 = vmul.f32 %v660_v0, %v178_v9  ;;  %v218_v13 = vmul.f32 %v660_v0, %v179_v10  ;;  %v180_v14 = vld [vmem:[%s665_s20 + $0x30] sm:$0xff]  ;;  %v181_v15 = vld [vmem:[%s665_s20 + $0x38] sm:$0xff]  ;;  %v182_v32 = vld [vmem:[%s665_s20 + $0x40] sm:$0xff] }
  0x13   : > { %v252_v16 = vadd.f32 %v670_v1, %v213_v5  ;;  %v253_v17 = vadd.f32 %v670_v1, %v214_v6  ;;  %v254_v18 = vadd.f32 %v670_v1, %v215_v7  ;;  %v219_v19 = vmul.f32 %v660_v0, %v180_v14  ;;  %v183_v33 = vld [vmem:[%s665_s20 + $0x48] sm:$0xff]  ;;  %v184_v34 = vld [vmem:[%s665_s20 + $0x50] sm:$0xff]  ;;  %v185_v39 = vld [vmem:[%s665_s20 + $0x58] sm:$0xff] }
  0x14   : > { %v255_v20 = vadd.f32 %v670_v1, %v216_v11  ;;  %v256_v21 = vadd.f32 %v670_v1, %v217_v12  ;;  %v257_v22 = vadd.f32 %v670_v1, %v218_v13  ;;  %v220_v23 = vmul.f32 %v660_v0, %v181_v15  ;;  %v186_v40 = vld [vmem:[%s665_s20 + $0x60] sm:$0xff]  ;;  %v187_v41 = vld [vmem:[%s665_s20 + $0x68] sm:$0xff]  ;;  %v188_v46 = vld [vmem:[%s665_s20 + $0x70] sm:$0xff] }
  0x15   : > { %v284_v24 = vmax.f32 %v252_v16, 0.0  ;;  %v285_v25 = vmax.f32 %v253_v17, 0.0  ;;  %v286_v26 = vmax.f32 %v254_v18, 0.0  ;;  %v258_v27 = vadd.f32 %v670_v1, %v219_v19  ;;  %v189_v51 = vld [vmem:[%s665_s20 + $0x78] sm:$0xff]  ;;  %v190_v10 = vld [vmem:[%s665_s20 + $0x80] sm:$0xff]  ;;  %v191_v11 = vld [vmem:[%s665_s20 + $0x88] sm:$0xff] }
  0x16   : > { %v287_v28 = vmax.f32 %v255_v20, 0.0  ;;  %v288_v29 = vmax.f32 %v256_v21, 0.0  ;;  %v289_v30 = vmax.f32 %v257_v22, 0.0  ;;  %v259_v31 = vadd.f32 %v670_v1, %v220_v23  ;;  %v192_v12 = vld [vmem:[%s665_s20 + $0x90] sm:$0xff]  ;;  %v193_v17 = vld [vmem:[%s665_s20 + $0x98] sm:$0xff]  ;;  %v194_v18 = vld [vmem:[%s665_s20 + $0xa0] sm:$0xff] }
  0x17   : > { %v578_v35 = vpack.c.bf16 %v284_v24, %v284_v24  ;;  %v579_v36 = vpack.c.bf16 %v285_v25, %v285_v25  ;;  %v580_v37 = vpack.c.bf16 %v286_v26, %v286_v26  ;;  %v290_v38 = vmax.f32 %v258_v27, 0.0  ;;  %v195_v19 = vld [vmem:[%s665_s20 + $0xa8] sm:$0xff]  ;;  %v196_v24 = vld [vmem:[%s665_s20 + $0xb0] sm:$0xff] }
  0x18   : > { %v581_v42 = vpack.c.bf16 %v287_v28, %v287_v28  ;;  %v582_v43 = vpack.c.bf16 %v288_v29, %v288_v29  ;;  %v583_v44 = vpack.c.bf16 %v289_v30, %v289_v30  ;;  %v291_v45 = vmax.f32 %v259_v31, 0.0  ;;  %v197_v29 = vld [vmem:[%s665_s20 + $0xb8] sm:$0xff] }
  0x19   : > { %445 = vst.msk [vmem:[%s699_s26] sm:$0xf] %vm444_vm0, %v578_v35  ;;  %446 = vst.msk [vmem:[%s699_s26 + $0x4] sm:$0xf] %vm444_vm0, %v579_v36  ;;  %v584_v47 = vpack.c.bf16 %v290_v38, %v290_v38  ;;  %v221_v48 = vmul.f32 %v660_v0, %v182_v32  ;;  %v222_v49 = vmul.f32 %v660_v0, %v183_v33 }
  0x1a   : > { %447 = vst.msk [vmem:[%s699_s26 + $0x8] sm:$0xf] %vm444_vm0, %v580_v37  ;;  %v223_v50 = vmul.f32 %v660_v0, %v184_v34  ;;  %448 = vst.msk [vmem:[%s699_s26 + $0xc] sm:$0xf] %vm444_vm0, %v581_v42  ;;  %v585_v52 = vpack.c.bf16 %v291_v45, %v291_v45  ;;  %v224_v53 = vmul.f32 %v660_v0, %v185_v39 }
  0x1b   : > { %449 = vst.msk [vmem:[%s699_s26 + $0x10] sm:$0xf] %vm444_vm0, %v582_v43  ;;  %450 = vst.msk [vmem:[%s699_s26 + $0x14] sm:$0xf] %vm444_vm0, %v583_v44  ;;  %v225_v54 = vmul.f32 %v660_v0, %v186_v40  ;;  %v226_v55 = vmul.f32 %v660_v0, %v187_v41  ;;  %v260_v56 = vadd.f32 %v670_v1, %v221_v48 }
  0x1c   : > { %451 = vst.msk [vmem:[%s699_s26 + $0x18] sm:$0xf] %vm444_vm0, %v584_v47  ;;  %v261_v57 = vadd.f32 %v670_v1, %v222_v49  ;;  %v262_v58 = vadd.f32 %v670_v1, %v223_v50  ;;  %v227_v59 = vmul.f32 %v660_v0, %v188_v46  ;;  %452 = vst.msk [vmem:[%s699_s26 + $0x1c] sm:$0xf] %vm444_vm0, %v585_v52  ;;  %v198_v50 = vld [vmem:[%s665_s20 + $0xc0] sm:$0xff]  ;;  %v200_v52 = vld [vmem:[%s665_s20 + $0xd0] sm:$0xff] }
  0x1d   : > { %v263_v60 = vadd.f32 %v670_v1, %v224_v53  ;;  %v264_v61 = vadd.f32 %v670_v1, %v225_v54  ;;  %v265_v62 = vadd.f32 %v670_v1, %v226_v55  ;;  %v228_v63 = vmul.f32 %v660_v0, %v189_v51  ;;  %v199_v51 = vld [vmem:[%s665_s20 + $0xc8] sm:$0xff] }
  0x1e   : > { %v292_v2 = vmax.f32 %v260_v56, 0.0  ;;  %v293_v3 = vmax.f32 %v261_v57, 0.0  ;;  %v294_v4 = vmax.f32 %v262_v58, 0.0  ;;  %v266_v5 = vadd.f32 %v670_v1, %v227_v59  ;;  %v201_v57 = vld [vmem:[%s665_s20 + $0xd8] sm:$0xff]  ;;  %v202_v58 = vld [vmem:[%s665_s20 + $0xe0] sm:$0xff]  ;;  %v203_v59 = vld [vmem:[%s665_s20 + $0xe8] sm:$0xff] }
  0x1f   : > { %v295_v6 = vmax.f32 %v263_v60, 0.0  ;;  %v296_v7 = vmax.f32 %v264_v61, 0.0  ;;  %v297_v8 = vmax.f32 %v265_v62, 0.0  ;;  %v267_v9 = vadd.f32 %v670_v1, %v228_v63 }
  0x20   : > { %v586_v13 = vpack.c.bf16 %v292_v2, %v292_v2  ;;  %v587_v14 = vpack.c.bf16 %v293_v3, %v293_v3  ;;  %v588_v15 = vpack.c.bf16 %v294_v4, %v294_v4  ;;  %v298_v16 = vmax.f32 %v266_v5, 0.0  ;;  %v204_v2 = vld [vmem:[%s665_s20 + $0xf0] sm:$0xff] }
  0x21   : > { %v589_v20 = vpack.c.bf16 %v295_v6, %v295_v6  ;;  %v590_v21 = vpack.c.bf16 %v296_v7, %v296_v7  ;;  %v591_v22 = vpack.c.bf16 %v297_v8, %v297_v8  ;;  %v299_v23 = vmax.f32 %v267_v9, 0.0  ;;  %v205_v7 = vld [vmem:[%s665_s20 + $0xf8] sm:$0xff] }
  0x22   : > { %453 = vst.msk [vmem:[%s699_s26 + $0x20] sm:$0xf] %vm444_vm0, %v586_v13  ;;  %454 = vst.msk [vmem:[%s699_s26 + $0x24] sm:$0xf] %vm444_vm0, %v587_v14  ;;  %v592_v25 = vpack.c.bf16 %v298_v16, %v298_v16  ;;  %v229_v26 = vmul.f32 %v660_v0, %v190_v10  ;;  %v230_v27 = vmul.f32 %v660_v0, %v191_v11 }
  0x23   : > { %455 = vst.msk [vmem:[%s699_s26 + $0x28] sm:$0xf] %vm444_vm0, %v588_v15  ;;  %v231_v28 = vmul.f32 %v660_v0, %v192_v12  ;;  %456 = vst.msk [vmem:[%s699_s26 + $0x2c] sm:$0xf] %vm444_vm0, %v589_v20  ;;  %v593_v30 = vpack.c.bf16 %v299_v23, %v299_v23  ;;  %v232_v31 = vmul.f32 %v660_v0, %v193_v17 }
  0x24   : > { %457 = vst.msk [vmem:[%s699_s26 + $0x30] sm:$0xf] %vm444_vm0, %v590_v21  ;;  %458 = vst.msk [vmem:[%s699_s26 + $0x34] sm:$0xf] %vm444_vm0, %v591_v22  ;;  %v233_v32 = vmul.f32 %v660_v0, %v194_v18  ;;  %v234_v33 = vmul.f32 %v660_v0, %v195_v19  ;;  %v268_v34 = vadd.f32 %v670_v1, %v229_v26 }
  0x25   : > { %459 = vst.msk [vmem:[%s699_s26 + $0x38] sm:$0xf] %vm444_vm0, %v592_v25  ;;  %v269_v35 = vadd.f32 %v670_v1, %v230_v27  ;;  %v270_v36 = vadd.f32 %v670_v1, %v231_v28  ;;  %v235_v37 = vmul.f32 %v660_v0, %v196_v24  ;;  %460 = vst.msk [vmem:[%s699_s26 + $0x3c] sm:$0xf] %vm444_vm0, %v593_v30 }
  0x26   : > { %v271_v38 = vadd.f32 %v670_v1, %v232_v31  ;;  %v272_v39 = vadd.f32 %v670_v1, %v233_v32  ;;  %v273_v40 = vadd.f32 %v670_v1, %v234_v33  ;;  %v236_v41 = vmul.f32 %v660_v0, %v197_v29 }
  0x27   : > { %v300_v42 = vmax.f32 %v268_v34, 0.0  ;;  %v301_v43 = vmax.f32 %v269_v35, 0.0  ;;  %v302_v44 = vmax.f32 %v270_v36, 0.0  ;;  %v274_v45 = vadd.f32 %v670_v1, %v235_v37 }
  0x28   : > { %v303_v46 = vmax.f32 %v271_v38, 0.0  ;;  %v304_v47 = vmax.f32 %v272_v39, 0.0  ;;  %v305_v48 = vmax.f32 %v273_v40, 0.0  ;;  %v275_v49 = vadd.f32 %v670_v1, %v236_v41 }
  0x29   : > { %v594_v53 = vpack.c.bf16 %v300_v42, %v300_v42  ;;  %v595_v54 = vpack.c.bf16 %v301_v43, %v301_v43  ;;  %v596_v55 = vpack.c.bf16 %v302_v44, %v302_v44  ;;  %v306_v56 = vmax.f32 %v274_v45, 0.0 }
  0x2a   : > { %v597_v60 = vpack.c.bf16 %v303_v46, %v303_v46  ;;  %v598_v61 = vpack.c.bf16 %v304_v47, %v304_v47  ;;  %v599_v62 = vpack.c.bf16 %v305_v48, %v305_v48  ;;  %v307_v63 = vmax.f32 %v275_v49, 0.0 }
  0x2b   : > { %461 = vst.msk [vmem:[%s699_s26 + $0x40] sm:$0xf] %vm444_vm0, %v594_v53  ;;  %462 = vst.msk [vmem:[%s699_s26 + $0x44] sm:$0xf] %vm444_vm0, %v595_v54  ;;  %v600_v3 = vpack.c.bf16 %v306_v56, %v306_v56  ;;  %v237_v4 = vmul.f32 %v660_v0, %v198_v50  ;;  %v238_v5 = vmul.f32 %v660_v0, %v199_v51 }
  0x2c   : > { %463 = vst.msk [vmem:[%s699_s26 + $0x48] sm:$0xf] %vm444_vm0, %v596_v55  ;;  %v239_v6 = vmul.f32 %v660_v0, %v200_v52  ;;  %464 = vst.msk [vmem:[%s699_s26 + $0x4c] sm:$0xf] %vm444_vm0, %v597_v60  ;;  %v601_v8 = vpack.c.bf16 %v307_v63, %v307_v63  ;;  %v240_v9 = vmul.f32 %v660_v0, %v201_v57 }
  0x2d   : > { %465 = vst.msk [vmem:[%s699_s26 + $0x50] sm:$0xf] %vm444_vm0, %v598_v61  ;;  %466 = vst.msk [vmem:[%s699_s26 + $0x54] sm:$0xf] %vm444_vm0, %v599_v62  ;;  %v241_v10 = vmul.f32 %v660_v0, %v202_v58  ;;  %v242_v11 = vmul.f32 %v660_v0, %v203_v59  ;;  %v276_v12 = vadd.f32 %v670_v1, %v237_v4 }
  0x2e   : > { %467 = vst.msk [vmem:[%s699_s26 + $0x58] sm:$0xf] %vm444_vm0, %v600_v3  ;;  %v277_v13 = vadd.f32 %v670_v1, %v238_v5  ;;  %v278_v14 = vadd.f32 %v670_v1, %v239_v6  ;;  %v243_v15 = vmul.f32 %v660_v0, %v204_v2  ;;  %468 = vst.msk [vmem:[%s699_s26 + $0x5c] sm:$0xf] %vm444_vm0, %v601_v8 }
  0x2f   : > { %v279_v16 = vadd.f32 %v670_v1, %v240_v9  ;;  %v280_v17 = vadd.f32 %v670_v1, %v241_v10  ;;  %v281_v18 = vadd.f32 %v670_v1, %v242_v11  ;;  %v244_v19 = vmul.f32 %v660_v0, %v205_v7 }
  0x30   : > { %v308_v20 = vmax.f32 %v276_v12, 0.0  ;;  %v309_v21 = vmax.f32 %v277_v13, 0.0  ;;  %v310_v22 = vmax.f32 %v278_v14, 0.0  ;;  %v282_v23 = vadd.f32 %v670_v1, %v243_v15 }
  0x31   : > { %v311_v24 = vmax.f32 %v279_v16, 0.0  ;;  %v312_v25 = vmax.f32 %v280_v17, 0.0  ;;  %v313_v26 = vmax.f32 %v281_v18, 0.0  ;;  %v283_v27 = vadd.f32 %v670_v1, %v244_v19 }
  0x32   : > { %v602_v28 = vpack.c.bf16 %v308_v20, %v308_v20  ;;  %v603_v29 = vpack.c.bf16 %v309_v21, %v309_v21  ;;  %v604_v0 = vpack.c.bf16 %v310_v22, %v310_v22  ;;  %v314_v30 = vmax.f32 %v282_v23, 0.0 }
  0x33   : > { %v605_v31 = vpack.c.bf16 %v311_v24, %v311_v24  ;;  %v606_v32 = vpack.c.bf16 %v312_v25, %v312_v25  ;;  %v607_v33 = vpack.c.bf16 %v313_v26, %v313_v26  ;;  %v315_v34 = vmax.f32 %v283_v27, 0.0 }
  0x34   : > { %469 = vst.msk [vmem:[%s699_s26 + $0x60] sm:$0xf] %vm444_vm0, %v602_v28  ;;  %470 = vst.msk [vmem:[%s699_s26 + $0x64] sm:$0xf] %vm444_vm0, %v603_v29  ;;  %v608_v35 = vpack.c.bf16 %v314_v30, %v314_v30 }
  0x35   : > { %471 = vst.msk [vmem:[%s699_s26 + $0x68] sm:$0xf] %vm444_vm0, %v604_v0  ;;  %472 = vst.msk [vmem:[%s699_s26 + $0x6c] sm:$0xf] %vm444_vm0, %v605_v31  ;;  %v609_v1 = vpack.c.bf16 %v315_v34, %v315_v34 }
  0x36   : > { %473 = vst.msk [vmem:[%s699_s26 + $0x70] sm:$0xf] %vm444_vm0, %v606_v32  ;;  %474 = vst.msk [vmem:[%s699_s26 + $0x74] sm:$0xf] %vm444_vm0, %v607_v33 }
  0x37   : > { %475 = vst.msk [vmem:[%s699_s26 + $0x78] sm:$0xf] %vm444_vm0, %v608_v35  ;;  %476 = vst.msk [vmem:[%s699_s26 + $0x7c] sm:$0xf] %vm444_vm0, %v609_v1 }
  0x38 PF: > { %s13_s12 = sadd.s32 1, %s624_s12  }
  0x39   : > { %p10_p4 = scmp.ge.s32.totalorder %s13_s12, 4  }
  0x3b   :  { %12 = sbr.rel (!%p10_p4) target bundleno = 1 (0x1), region = 62 }

// kernel: network_block_forward.8
= control target key start
LH: loop header
LB: loop body
LE: loop exit
PB: predicated region body
PF: predicated region fallthrough
CT: control target
= control target key end

     0   :  { %s914_s15 = smov 0   ;;  %s916_s16 = smov 0   ;;  %s990_s0 = inlined_call_operand.vmem [shape: bf16[128,128], index: 0, kind: input, shape index: {}]   ;;  %s991_s1 = inlined_call_operand.vmem [shape: bf16[128,128], index: 1, kind: input, shape index: {}]   ;;  %s992_s2 = inlined_call_operand.vmem [shape: f32[1,128], index: 2, kind: input, shape index: {}]   ;;  %s993_s3 = inlined_call_operand.vmem [shape: f32[1,128], index: 3, kind: input, shape index: {}]   ;;  %s994_s4 = inlined_call_operand.vmem [shape: bf16[128,128], index: 4, kind: output, shape index: {}]  }
   0x1   :  { %s918_s17 = smov 0  }
   0x2 LB: > { %s33_s18 = sadd.s32 1, %s883_s16  ;;  %p717_p0 = scmp.ge.s32.totalorder %s887_s17, 1  ;;  %s887_s17 = sphi %s918_s17, %s14_s17   ;;  %s883_s16 = sphi %s916_s16, %s996_s16   ;;  %s879_s15 = sphi %s914_s15, %s995_s15  }
   0x3   : > { %p35_p1 = scmp.ge.s32.totalorder %s33_s18, 2  ;;  %p221_p2 = scmp.lt.s32.totalorder %s887_s17, 3 }
   0x5   : > { %s998_s18 = smov (%p35_p1, %s33_s18), 0  ;;  %p222_p3 = pnand %p717_p0, %p221_p2 }
   0x6   : > { %v853_v0 = vld [vmem:[%s991_s1] sm:$0xff] (!%p222_p3)   ;;  %s718_s21 = sshll.u32 (!%p222_p3), %s879_s15, 3  ;;  %v854_v1 = vld [vmem:[%s991_s1 + $0x8] sm:$0xff] (!%p222_p3)   ;;  %v855_v2 = vld [vmem:[%s991_s1 + $0x10] sm:$0xff] (!%p222_p3)  }
   0x7   : > { %225 = sbr.rel (%p222_p3) target bundleno = 263 (0x107), region = 36  ;;  %p268_p4 = scmp.lt.s32.totalorder (!%p222_p3), %s718_s21, 15  ;;  %789 = vmatprep.subr.bf16.mxu0 (!%p222_p3), %v853_v0  ;;  %813 = vmatprep.subr.bf16.mxu1 (!%p222_p3), %v853_v0  ;;  %v856_v3 = vld [vmem:[%s991_s1 + $0x18] sm:$0xff] (!%p222_p3)   ;;  %v857_v6 = vld [vmem:[%s991_s1 + $0x20] sm:$0xff] (!%p222_p3)   ;;  %v858_v7 = vld [vmem:[%s991_s1 + $0x28] sm:$0xff] (!%p222_p3)  }
   0x8   : > { %790 = vmatpush3.bf16.msra.mxu0 (!%p222_p3), %v853_v0  ;;  %821 = vmatpush3.bf16.msra.mxu1 (!%p222_p3), %v853_v0  ;;  %v859_v8 = vld [vmem:[%s991_s1 + $0x30] sm:$0xff] (!%p222_p3)   ;;  %v860_v9 = vld [vmem:[%s991_s1 + $0x38] sm:$0xff] (!%p222_p3)   ;;  %v734_v12 = vld [vmem:[%s992_s2] ss:$0 sm:$0xff] (!%p222_p3) }
   0x9   : > { %791 = vmatprep.subr.bf16.mxu0 (!%p222_p3), %v854_v1  ;;  %814 = vmatprep.subr.bf16.mxu1 (!%p222_p3), %v854_v1  ;;  %v735_v14 = vld [vmem:[%s993_s3] ss:$0 sm:$0xff] (!%p222_p3) }
   0xc   : > { %792 = vmatpush3.bf16.msra.mxu0 (!%p222_p3), %v854_v1  ;;  %822 = vmatpush3.bf16.msra.mxu1 (!%p222_p3), %v854_v1 }
   0xd   : > { %793 = vmatprep.subr.bf16.mxu0 (!%p222_p3), %v855_v2  ;;  %815 = vmatprep.subr.bf16.mxu1 (!%p222_p3), %v855_v2 }
   0xe   : > { %s1000_s21 = smov (!%p268_p4, %s718_s21), 15 }
   0xf   : > { %s719_s26 = sshll.u32 %s1000_s21, 2 }
  0x10   : > { %s949_s29 = scalar_lea.vmem %s990_s0, %s719_s26  ;;  %794 = vmatpush3.bf16.msra.mxu0 %v855_v2  ;;  %823 = vmatpush3.bf16.msra.mxu1 %v855_v2  ;;  %s298_s24 = scalar_lea.vmem %s994_s4, %s719_s26 }
  0x11   : > { %v861_v4 = vld [vmem:[%s949_s29] sm:$0xff]   ;;  %v862_v5 = vld [vmem:[%s949_s29 + $0x10] sm:$0xff]   ;;  %795 = vmatprep.subr.bf16.mxu0 %v856_v3  ;;  %816 = vmatprep.subr.bf16.mxu1 %v856_v3  ;;  %v863_v10 = vld [vmem:[%s949_s29 + $0x8] sm:$0xff]  }
  0x12   : > { %805 = vmatprep.mubr.bf16.mxu0 %v861_v4  ;;  %809 = vmatprep.mubr.bf16.mxu1 %v862_v5  ;;  %v864_v11 = vld [vmem:[%s949_s29 + $0x18] sm:$0xff]  }
  0x14   : > { %796 = vmatpush3.bf16.msra.mxu0 %v856_v3  ;;  %824 = vmatpush3.bf16.msra.mxu1 %v856_v3 }
  0x15   : > { %797 = vmatprep.subr.bf16.mxu0 %v857_v6  ;;  %817 = vmatprep.subr.bf16.mxu1 %v857_v6 }
  0x18   : > { %798 = vmatpush3.bf16.msra.mxu0 %v857_v6  ;;  %825 = vmatpush3.bf16.msra.mxu1 %v857_v6 }
  0x19   : > { %799 = vmatprep.subr.bf16.mxu0 %v858_v7  ;;  %818 = vmatprep.subr.bf16.mxu1 %v858_v7 }
  0x1c   : > { %800 = vmatpush3.bf16.msra.mxu0 %v858_v7  ;;  %826 = vmatpush3.bf16.msra.mxu1 %v858_v7 }
  0x1d   : > { %801 = vmatprep.subr.bf16.mxu0 %v859_v8  ;;  %819 = vmatprep.subr.bf16.mxu1 %v859_v8 }
  0x20   : > { %802 = vmatpush3.bf16.msra.mxu0 %v859_v8  ;;  %827 = vmatpush3.bf16.msra.mxu1 %v859_v8 }
  0x21   : > { %803 = vmatprep.subr.bf16.mxu0 %v860_v9  ;;  %820 = vmatprep.subr.bf16.mxu1 %v860_v9 }
  0x24   : > { %804 = vmatpush3.bf16.msra.mxu0 %v860_v9  ;;  %828 = vmatpush3.bf16.msra.mxu1 %v860_v9 }
  0x27   : > { %806 = vmatmul.mubr.bf16.vlgmr.msra.gmra.mrb[0].mxu0 %v863_v10  ;;  %810 = vmatmul.mubr.bf16.vlgmr.msra.gmra.mrb[0].mxu1 %v864_v11 }
  0xfa   : > { %v807_v13 = vpop.f32.mrb[0].mxu0  ;;  %v811_v15 = vpop.f32.mrb[0].mxu1 }
  0xfb   : > { %v518_v16 = vmul.f32 %v807_v13, %v734_v12  ;;  %v522_v17 = vmul.f32 %v811_v15, %v734_v12  ;;  %v451_v18 = vpop.f32.mrb[1].mxu0  ;;  %v467_v19 = vpop.f32.mrb[1].mxu1 }
  0xfc   : > { %v516_v20 = vmul.f32 %v734_v12, %v451_v18  ;;  %v520_v21 = vmul.f32 %v734_v12, %v467_v19  ;;  %v808_v22 = vpop.f32.mrb[2].mxu0  ;;  %v812_v23 = vpop.f32.mrb[2].mxu1 }
  0xfd   : > { %v533_v24 = vadd.f32 %v735_v14, %v518_v16  ;;  %v537_v25 = vadd.f32 %v735_v14, %v522_v17  ;;  %v519_v26 = vmul.f32 %v808_v22, %v734_v12  ;;  %v523_v27 = vmul.f32 %v812_v23, %v734_v12  ;;  %v454_v28 = vpop.f32.mrb[3].mxu0  ;;  %v470_v29 = vpop.f32.mrb[3].mxu1 }
  0xfe   : > { %v531_v30 = vadd.f32 %v735_v14, %v516_v20  ;;  %v535_v31 = vadd.f32 %v735_v14, %v520_v21  ;;  %v517_v32 = vmul.f32 %v734_v12, %v454_v28  ;;  %v521_v33 = vmul.f32 %v734_v12, %v470_v29 }
  0xff   : > { %v534_v34 = vadd.f32 %v735_v14, %v519_v26  ;;  %v538_v35 = vadd.f32 %v735_v14, %v523_v27  ;;  %v541_v38 = vmax.f32 %v533_v24, 0.0  ;;  %v545_v39 = vmax.f32 %v537_v25, 0.0 }
 0x100   : > { %v532_v36 = vadd.f32 %v735_v14, %v517_v32  ;;  %v536_v37 = vadd.f32 %v735_v14, %v521_v33  ;;  %v539_v42 = vmax.f32 %v531_v30, 0.0  ;;  %v543_v43 = vmax.f32 %v535_v31, 0.0 }
 0x101   : > { %v542_v40 = vmax.f32 %v534_v34, 0.0  ;;  %v546_v41 = vmax.f32 %v538_v35, 0.0 }
 0x102   : > { %v540_v44 = vmax.f32 %v532_v36, 0.0  ;;  %v544_v45 = vmax.f32 %v536_v37, 0.0 }
 0x103   : > { %v762_v46 = vpack.c.bf16 %v542_v40, %v541_v38  ;;  %v772_v47 = vpack.c.bf16 %v546_v41, %v545_v39 }
 0x104   : > { %v757_v48 = vpack.c.bf16 %v540_v44, %v539_v42  ;;  %v767_v49 = vpack.c.bf16 %v544_v45, %v543_v43 }
 0x105   : > { %774 = vst [vmem:[%s298_s24 + $0x8] sm:$0xff] %v762_v46   ;;  %776 = vst [vmem:[%s298_s24 + $0x18] sm:$0xff] %v772_v47  }
 0x106   : > { %758 = vst [vmem:[%s298_s24] sm:$0xff] %v757_v48   ;;  %775 = vst [vmem:[%s298_s24 + $0x10] sm:$0xff] %v767_v49  }
 0x107 PF: > { %s14_s17 = sadd.s32 1, %s887_s17   ;;  %s995_s15 = smov %s883_s16 }
 0x108   : > { %p11_p5 = scmp.ge.s32.totalorder %s14_s17, 4   ;;  %s996_s16 = smov %s998_s18 }
 0x10a   :  { %13 = sbr.rel (!%p11_p5) target bundleno = 2 (0x2), region = 83 }

// kernel: network_block_forward.9
= control target key start
LH: loop header
LB: loop body
LE: loop exit
PB: predicated region body
PF: predicated region fallthrough
CT: control target
= control target key end

     0   :  { %s685_s9 = smov 0   ;;  %s687_s10 = smov 0   ;;  %s752_s0 = inlined_call_operand.vmem [shape: bf16[128,128], index: 0, kind: input, shape index: {}]   ;;  %s753_s1 = inlined_call_operand.vmem [shape: bf16[128,128], index: 1, kind: input, shape index: {}]   ;;  %s754_s2 = inlined_call_operand.vmem [shape: f32[128,128], index: 2, kind: output, shape index: {}]  }
   0x1   :  { %s689_s11 = smov 0  }
   0x2 LB: > { %s31_s12 = sadd.s32 1, %s664_s10  ;;  %p539_p0 = scmp.ge.s32.totalorder %s668_s11, 1  ;;  %s668_s11 = sphi %s689_s11, %s12_s11   ;;  %s664_s10 = sphi %s687_s10, %s756_s10   ;;  %s660_s9 = sphi %s685_s9, %s755_s9  }
   0x3   : > { %p33_p1 = scmp.ge.s32.totalorder %s31_s12, 2  ;;  %p155_p2 = scmp.lt.s32.totalorder %s668_s11, 3 }
   0x5   : > { %s758_s12 = smov (%p33_p1, %s31_s12), 0  ;;  %p156_p3 = pnand %p539_p0, %p155_p2 }
   0x6   : > { %v634_v0 = vld [vmem:[%s753_s1] sm:$0xff] (!%p156_p3)   ;;  %s540_s15 = sshll.u32 (!%p156_p3), %s660_s9, 3  ;;  %v635_v1 = vld [vmem:[%s753_s1 + $0x8] sm:$0xff] (!%p156_p3)   ;;  %v636_v2 = vld [vmem:[%s753_s1 + $0x10] sm:$0xff] (!%p156_p3)  }
   0x7   : > { %159 = sbr.rel (%p156_p3) target bundleno = 255 (0xff), region = 28  ;;  %p192_p4 = scmp.lt.s32.totalorder (!%p156_p3), %s540_s15, 15  ;;  %570 = vmatprep.subr.bf16.mxu0 (!%p156_p3), %v634_v0  ;;  %594 = vmatprep.subr.bf16.mxu1 (!%p156_p3), %v634_v0  ;;  %v637_v3 = vld [vmem:[%s753_s1 + $0x18] sm:$0xff] (!%p156_p3)   ;;  %v638_v6 = vld [vmem:[%s753_s1 + $0x20] sm:$0xff] (!%p156_p3)   ;;  %v639_v7 = vld [vmem:[%s753_s1 + $0x28] sm:$0xff] (!%p156_p3)  }
   0x8   : > { %571 = vmatpush3.bf16.msra.mxu0 (!%p156_p3), %v634_v0  ;;  %602 = vmatpush3.bf16.msra.mxu1 (!%p156_p3), %v634_v0  ;;  %v640_v8 = vld [vmem:[%s753_s1 + $0x30] sm:$0xff] (!%p156_p3)   ;;  %v641_v9 = vld [vmem:[%s753_s1 + $0x38] sm:$0xff] (!%p156_p3)  }
   0x9   : > { %572 = vmatprep.subr.bf16.mxu0 (!%p156_p3), %v635_v1  ;;  %595 = vmatprep.subr.bf16.mxu1 (!%p156_p3), %v635_v1 }
   0xc   : > { %573 = vmatpush3.bf16.msra.mxu0 (!%p156_p3), %v635_v1  ;;  %603 = vmatpush3.bf16.msra.mxu1 (!%p156_p3), %v635_v1 }
   0xd   : > { %574 = vmatprep.subr.bf16.mxu0 (!%p156_p3), %v636_v2  ;;  %596 = vmatprep.subr.bf16.mxu1 (!%p156_p3), %v636_v2 }
   0xe   : > { %s760_s15 = smov (!%p192_p4, %s540_s15), 15 }
   0xf   : > { %s541_s20 = sshll.u32 %s760_s15, 2  ;;  %s543_s6 = sshll.u32 %s760_s15, 3 }
  0x10   : > { %s718_s23 = scalar_lea.vmem %s752_s0, %s541_s20  ;;  %575 = vmatpush3.bf16.msra.mxu0 %v636_v2  ;;  %604 = vmatpush3.bf16.msra.mxu1 %v636_v2  ;;  %s216_s9 = scalar_lea.vmem %s754_s2, %s543_s6 }
  0x11   : > { %v642_v4 = vld [vmem:[%s718_s23] sm:$0xff]   ;;  %v643_v5 = vld [vmem:[%s718_s23 + $0x10] sm:$0xff]   ;;  %576 = vmatprep.subr.bf16.mxu0 %v637_v3  ;;  %597 = vmatprep.subr.bf16.mxu1 %v637_v3  ;;  %v644_v10 = vld [vmem:[%s718_s23 + $0x8] sm:$0xff]  }
  0x12   : > { %586 = vmatprep.mubr.bf16.mxu0 %v642_v4  ;;  %590 = vmatprep.mubr.bf16.mxu1 %v643_v5  ;;  %v645_v11 = vld [vmem:[%s718_s23 + $0x18] sm:$0xff]  }
  0x14   : > { %577 = vmatpush3.bf16.msra.mxu0 %v637_v3  ;;  %605 = vmatpush3.bf16.msra.mxu1 %v637_v3 }
  0x15   : > { %578 = vmatprep.subr.bf16.mxu0 %v638_v6  ;;  %598 = vmatprep.subr.bf16.mxu1 %v638_v6 }
  0x18   : > { %579 = vmatpush3.bf16.msra.mxu0 %v638_v6  ;;  %606 = vmatpush3.bf16.msra.mxu1 %v638_v6 }
  0x19   : > { %580 = vmatprep.subr.bf16.mxu0 %v639_v7  ;;  %599 = vmatprep.subr.bf16.mxu1 %v639_v7 }
  0x1c   : > { %581 = vmatpush3.bf16.msra.mxu0 %v639_v7  ;;  %607 = vmatpush3.bf16.msra.mxu1 %v639_v7 }
  0x1d   : > { %582 = vmatprep.subr.bf16.mxu0 %v640_v8  ;;  %600 = vmatprep.subr.bf16.mxu1 %v640_v8 }
  0x20   : > { %583 = vmatpush3.bf16.msra.mxu0 %v640_v8  ;;  %608 = vmatpush3.bf16.msra.mxu1 %v640_v8 }
  0x21   : > { %584 = vmatprep.subr.bf16.mxu0 %v641_v9  ;;  %601 = vmatprep.subr.bf16.mxu1 %v641_v9 }
  0x24   : > { %585 = vmatpush3.bf16.msra.mxu0 %v641_v9  ;;  %609 = vmatpush3.bf16.msra.mxu1 %v641_v9 }
  0x27   : > { %587 = vmatmul.mubr.bf16.vlgmr.msra.gmra.mrb[0].mxu0 %v644_v10  ;;  %591 = vmatmul.mubr.bf16.vlgmr.msra.gmra.mrb[0].mxu1 %v645_v11 }
  0xfa   : > { %v588_v12 = vpop.f32.mrb[0].mxu0  ;;  %v592_v13 = vpop.f32.mrb[0].mxu1 }
  0xfb   : > { %429 = vst [vmem:[%s216_s9 + $0x10] sm:$0xff] %v588_v12  ;;  %433 = vst [vmem:[%s216_s9 + $0x30] sm:$0xff] %v592_v13  ;;  %v369_v14 = vpop.f32.mrb[1].mxu0  ;;  %v385_v15 = vpop.f32.mrb[1].mxu1 }
  0xfc   : > { %427 = vst [vmem:[%s216_s9] sm:$0xff] %v369_v14  ;;  %431 = vst [vmem:[%s216_s9 + $0x20] sm:$0xff] %v385_v15  ;;  %v589_v16 = vpop.f32.mrb[2].mxu0  ;;  %v593_v17 = vpop.f32.mrb[2].mxu1 }
  0xfd   : > { %430 = vst [vmem:[%s216_s9 + $0x18] sm:$0xff] %v589_v16  ;;  %434 = vst [vmem:[%s216_s9 + $0x38] sm:$0xff] %v593_v17  ;;  %v372_v18 = vpop.f32.mrb[3].mxu0  ;;  %v388_v19 = vpop.f32.mrb[3].mxu1 }
  0xfe   : > { %428 = vst [vmem:[%s216_s9 + $0x8] sm:$0xff] %v372_v18  ;;  %432 = vst [vmem:[%s216_s9 + $0x28] sm:$0xff] %v388_v19 }
  0xff PF: > { %s12_s11 = sadd.s32 1, %s668_s11   ;;  %s755_s9 = smov %s664_s10 }
 0x100   : > { %p9_p5 = scmp.ge.s32.totalorder %s12_s11, 4   ;;  %s756_s10 = smov %s758_s12 }
 0x102   :  { %11 = sbr.rel (!%p9_p5) target bundleno = 2 (0x2), region = 69 }

// kernel: network_block_forward.11
= control target key start
LH: loop header
LB: loop body
LE: loop exit
PB: predicated region body
PF: predicated region fallthrough
CT: control target
= control target key end

     0   :  { %s382_s12 = smov 0   ;;  %s417_s0 = inlined_call_operand.vmem [shape: f32[128,8], index: 0, kind: input, shape index: {}]   ;;  %s418_s1 = inlined_call_operand.vmem [shape: f32[1,8], index: 1, kind: input, shape index: {}]   ;;  %s419_s2 = inlined_call_operand.vmem [shape: f32[1,8], index: 2, kind: input, shape index: {}]   ;;  %s420_s3 = inlined_call_operand.vmem [shape: bf16[128,8], index: 3, kind: output, shape index: {}]  }
   0x1 LB: > { %s317_s13 = sadd.s32 4294967295, %s360_s12   ;;  %p321_p0 = scmp.ge.s32.totalorder %s360_s12, 1  ;;  %s360_s12 = sphi %s382_s12, %s13_s12  }
   0x2   : > { %p138_p1 = scmp.lt.s32.totalorder %s360_s12, 3 }
   0x4   : > { %p139_p2 = pnand %p321_p0, %p138_p1 }
   0x5   : > { %s322_s14 = sshll.u32 (!%p139_p2), %s317_s13, 3  ;;  %v326_v0 = vld [vmem:[%s418_s1] ss:$0 sm:$0xff] (!%p139_p2)  ;;  %vm252_vm0 = vcmask (!%p139_p2), 60416  }
   0x6   : > { %142 = sbr.rel (%p139_p2) target bundleno = 29 (0x1d), region = 32  ;;  %p163_p3 = scmp.lt.s32.totalorder (!%p139_p2), %s322_s14, 15  ;;  %v327_v1 = vld [vmem:[%s419_s2] ss:$0 sm:$0xff] (!%p139_p2) }
   0xd   : > { %s422_s14 = smov (!%p163_p3, %s322_s14), 15 }
   0xe   : > { %s323_s15 = sshll.u32 %s422_s14, 3  ;;  %s325_s23 = sshll.u32 %s422_s14, 2 }
   0xf   : > { %s166_s20 = scalar_lea.vmem %s417_s0, %s323_s15  ;;  %s172_s26 = scalar_lea.vmem %s420_s3, %s325_s23 }
  0x10   : > { %v174_v2 = vld [vmem:[%s166_s20] sm:$0xff]  ;;  %v175_v3 = vld [vmem:[%s166_s20 + $0x8] sm:$0xff]  ;;  %v176_v4 = vld [vmem:[%s166_s20 + $0x10] sm:$0xff] }
  0x11   : > { %v189_v5 = vmul.f32 %v326_v0, %v174_v2  ;;  %v190_v6 = vmul.f32 %v326_v0, %v175_v3  ;;  %v191_v7 = vmul.f32 %v326_v0, %v176_v4  ;;  %v177_v8 = vld [vmem:[%s166_s20 + $0x18] sm:$0xff]  ;;  %v178_v9 = vld [vmem:[%s166_s20 + $0x20] sm:$0xff]  ;;  %v179_v10 = vld [vmem:[%s166_s20 + $0x28] sm:$0xff] }
  0x12   : > { %v192_v11 = vmul.f32 %v326_v0, %v177_v8  ;;  %v193_v12 = vmul.f32 %v326_v0, %v178_v9  ;;  %v194_v13 = vmul.f32 %v326_v0, %v179_v10  ;;  %v180_v14 = vld [vmem:[%s166_s20 + $0x30] sm:$0xff]  ;;  %v181_v15 = vld [vmem:[%s166_s20 + $0x38] sm:$0xff] }
  0x13   : > { %v204_v16 = vadd.f32 %v327_v1, %v189_v5  ;;  %v205_v17 = vadd.f32 %v327_v1, %v190_v6  ;;  %v206_v18 = vadd.f32 %v327_v1, %v191_v7  ;;  %v195_v19 = vmul.f32 %v326_v0, %v180_v14 }
  0x14   : > { %v207_v20 = vadd.f32 %v327_v1, %v192_v11  ;;  %v208_v21 = vadd.f32 %v327_v1, %v193_v12  ;;  %v209_v22 = vadd.f32 %v327_v1, %v194_v13  ;;  %v196_v23 = vmul.f32 %v326_v0, %v181_v15 }
  0x15   : > { %v212_v24 = vmax.f32 %v204_v16, 0.0  ;;  %v213_v25 = vmax.f32 %v205_v17, 0.0  ;;  %v214_v26 = vmax.f32 %v206_v18, 0.0  ;;  %v210_v27 = vadd.f32 %v327_v1, %v195_v19 }
  0x16   : > { %v215_v28 = vmax.f32 %v207_v20, 0.0  ;;  %v216_v29 = vmax.f32 %v208_v21, 0.0  ;;  %v217_v30 = vmax.f32 %v209_v22, 0.0  ;;  %v211_v31 = vadd.f32 %v327_v1, %v196_v23 }
  0x17   : > { %v338_v32 = vpack.c.bf16 %v212_v24, %v212_v24  ;;  %v339_v33 = vpack.c.bf16 %v213_v25, %v213_v25  ;;  %v340_v34 = vpack.c.bf16 %v214_v26, %v214_v26  ;;  %v218_v35 = vmax.f32 %v210_v27, 0.0 }
  0x18   : > { %v341_v36 = vpack.c.bf16 %v215_v28, %v215_v28  ;;  %v342_v37 = vpack.c.bf16 %v216_v29, %v216_v29  ;;  %v343_v38 = vpack.c.bf16 %v217_v30, %v217_v30  ;;  %v219_v39 = vmax.f32 %v211_v31, 0.0 }
  0x19   : > { %253 = vst.msk [vmem:[%s172_s26] sm:$0xf] %vm252_vm0, %v338_v32  ;;  %254 = vst.msk [vmem:[%s172_s26 + $0x4] sm:$0xf] %vm252_vm0, %v339_v33  ;;  %v344_v40 = vpack.c.bf16 %v218_v35, %v218_v35 }
  0x1a   : > { %255 = vst.msk [vmem:[%s172_s26 + $0x8] sm:$0xf] %vm252_vm0, %v340_v34  ;;  %256 = vst.msk [vmem:[%s172_s26 + $0xc] sm:$0xf] %vm252_vm0, %v341_v36  ;;  %v345_v41 = vpack.c.bf16 %v219_v39, %v219_v39 }
  0x1b   : > { %257 = vst.msk [vmem:[%s172_s26 + $0x10] sm:$0xf] %vm252_vm0, %v342_v37  ;;  %258 = vst.msk [vmem:[%s172_s26 + $0x14] sm:$0xf] %vm252_vm0, %v343_v38 }
  0x1c   : > { %259 = vst.msk [vmem:[%s172_s26 + $0x18] sm:$0xf] %vm252_vm0, %v344_v40  ;;  %260 = vst.msk [vmem:[%s172_s26 + $0x1c] sm:$0xf] %vm252_vm0, %v345_v41 }
  0x1d PF: > { %s13_s12 = sadd.s32 1, %s360_s12  }
  0x1e   : > { %p10_p4 = scmp.ge.s32.totalorder %s13_s12, 4  }
  0x20   :  { %12 = sbr.rel (!%p10_p4) target bundleno = 1 (0x1), region = 62 }

// kernel: network_block_forward.10
= control target key start
LH: loop header
LB: loop body
LE: loop exit
PB: predicated region body
PF: predicated region fallthrough
CT: control target
= control target key end

     0   :  { %s1252_s12 = smov 0   ;;  %s1254_s13 = smov 0   ;;  %s1427_s0 = inlined_call_operand.vmem [shape: bf16[128,1152], index: 0, kind: input, shape index: {}]   ;;  %s1428_s1 = inlined_call_operand.vmem [shape: bf16[1152,128], index: 1, kind: input, shape index: {}]   ;;  %s1429_s2 = inlined_call_operand.vmem [shape: f32[128,128], index: 2, kind: input, shape index: {}]   ;;  %s1430_s3 = inlined_call_operand.vmem [shape: f32[128,128], index: 3, kind: output, shape index: {}]  }
   0x1   :  { %s1256_s14 = smov 0   ;;  %s1258_s15 = smov 0  }
   0x2   :  { %s1260_s16 = smov 0   ;;  %s1262_s17 = smov 0  }
   0x3   :  { %s1264_s18 = smov 0  }
   0x4 LB: > { %s25_s19 = sadd.s32 1, %s1221_s16  ;;  %s32_s20 = sadd.s32 1, %s1225_s17  ;;  %s1229_s18 = sphi %s1264_s18, %s13_s18   ;;  %s1225_s17 = sphi %s1262_s17, %s1436_s17   ;;  %s1221_s16 = sphi %s1260_s16, %s1435_s16   ;;  %s1217_s15 = sphi %s1258_s15, %s1434_s15   ;;  %s1213_s14 = sphi %s1256_s14, %s1433_s14   ;;  %s1209_s13 = sphi %s1254_s13, %s1432_s13   ;;  %s1205_s12 = sphi %s1252_s12, %s1431_s12  }
   0x5   : > { %p26_p0 = scmp.ge.s32.totalorder %s25_s19, 3  ;;  %p48_p1 = scmp.ne.s32.totalorder %s1209_s13, %s1205_s12 }
   0x6   : > { %p49_p2 = scmp.eq.s32.totalorder %s1229_s18, 0  ;;  %s41_s24 = sadd.s32 1, %s1209_s13 }
   0x7   : > { %s1438_s19 = smov (%p26_p0, %s25_s19), 0  ;;  %s1440_s20 = smov (!%p26_p0, %s32_s20), %s1225_s17 }
   0x8   : > { %p50_p3 = por %p49_p2, %p48_p1  ;;  %p34_p4 = scmp.ge.s32.totalorder %s1440_s20, 2 }
   0x9   : > { %s37_s21 = ssub.s32 %s1221_s16, %s1438_s19  ;;  %p933_p6 = scmp.ge.s32.totalorder %s1229_s18, 6 }
   0xa   : > { %s1442_s20 = smov (%p34_p4, %s1440_s20), 0 }
   0xb   : > { %s36_s22 = ssub.s32 %s1225_s17, %s1442_s20  ;;  %158 = sbr.rel (%p933_p6) target bundleno = 36 (0x24), region = 16 }
   0xc   : > { %s38_s23 = sor.u32 %s37_s21, %s36_s22 }
   0xd   : > { %p39_p5 = scmp.eq.s32.totalorder %s38_s23, 0 }
   0xf   : > { %s1303_s25 = scalar_select %p39_p5, %s1209_s13, %s41_s24  }
  0x12   : > { %161 = sbr.rel (!%p50_p3) target bundleno = 36 (0x24), region = 20  ;;  %s163_s26 = sand.u32 (%p50_p3), 1, %s1209_s13  }
  0x13   : > { %s167_s27 = smul.u32 (%p50_p3), 3, %s1221_s16 }
  0x14   : > { %s1075_s28 = smul.u32 (%p50_p3), 96, %s163_s26 }
  0x15   : > { %s1076_s29 = smul.u32 (%p50_p3), 72, %s1225_s17 }
  0x16   : > { %s165_s8 = scalar_lea.vmem (%p50_p3), [#allocation3], %s1075_s28 }
  0x17   : > { %s169_s30 = sadd.s32 (%p50_p3), %s1076_s29, %s167_s27 }
  0x18   : > { %s936_s4 = sshll.u32 (%p50_p3), %s169_s30, 2 }
  0x19   : > { %s1312_s7 = scalar_lea.vmem %s1427_s0, %s936_s4 }
  0x1a   : > { %v186_v0 = vld [vmem:[%s1312_s7] sm:$0xff]  ;;  %v190_v2 = vld [vmem:[%s1312_s7 + $0x48] sm:$0xff]  ;;  %v194_v4 = vld [vmem:[%s1312_s7 + $0x90] sm:$0xff] }
  0x1b   : > { %v188_v1 = vld [vmem:[%s1312_s7 + $0x24] sm:$0xff]  ;;  %187 = vst [vmem:[%s165_s8] sm:$0xff] %v186_v0  ;;  %191 = vst [vmem:[%s165_s8 + $0x18] sm:$0xff] %v190_v2  ;;  %v192_v3 = vld [vmem:[%s1312_s7 + $0x6c] sm:$0xff] }
  0x1c   : > { %189 = vst [vmem:[%s165_s8 + $0xc] sm:$0xff] %v188_v1  ;;  %v196_v5 = vld [vmem:[%s1312_s7 + $0xb4] sm:$0xff]  ;;  %193 = vst [vmem:[%s165_s8 + $0x24] sm:$0xff] %v192_v3  ;;  %v200_v7 = vld [vmem:[%s1312_s7 + $0xfc] sm:$0xff] }
  0x1d   : > { %195 = vst [vmem:[%s165_s8 + $0x30] sm:$0xff] %v194_v4  ;;  %197 = vst [vmem:[%s165_s8 + $0x3c] sm:$0xff] %v196_v5  ;;  %v198_v6 = vld [vmem:[%s1312_s7 + $0xd8] sm:$0xff]  ;;  %v937_v8 = vld [vmem:[%s1312_s7 + $0x8] sm:$0xf] }
  0x1e   : > { %199 = vst [vmem:[%s165_s8 + $0x48] sm:$0xff] %v198_v6  ;;  %201 = vst [vmem:[%s165_s8 + $0x54] sm:$0xff] %v200_v7  ;;  %v939_v9 = vld [vmem:[%s1312_s7 + $0x2c] sm:$0xf]  ;;  %v941_v10 = vld [vmem:[%s1312_s7 + $0x50] sm:$0xf] }
  0x1f   : > { %938 = vst [vmem:[%s165_s8 + $0x8] sm:$0xf] %v937_v8  ;;  %v943_v11 = vld [vmem:[%s1312_s7 + $0x74] sm:$0xf]  ;;  %940 = vst [vmem:[%s165_s8 + $0x14] sm:$0xf] %v939_v9 }
  0x20   : > { %942 = vst [vmem:[%s165_s8 + $0x20] sm:$0xf] %v941_v10  ;;  %944 = vst [vmem:[%s165_s8 + $0x2c] sm:$0xf] %v943_v11  ;;  %v945_v12 = vld [vmem:[%s1312_s7 + $0x98] sm:$0xf] }
  0x21   : > { %v947_v13 = vld [vmem:[%s1312_s7 + $0xbc] sm:$0xf]  ;;  %v949_v14 = vld [vmem:[%s1312_s7 + $0xe0] sm:$0xf]  ;;  %946 = vst [vmem:[%s165_s8 + $0x38] sm:$0xf] %v945_v12 }
  0x22   : > { %948 = vst [vmem:[%s165_s8 + $0x44] sm:$0xf] %v947_v13  ;;  %950 = vst [vmem:[%s165_s8 + $0x50] sm:$0xf] %v949_v14  ;;  %v951_v15 = vld [vmem:[%s1312_s7 + $0x104] sm:$0xf] }
  0x23   : > { %952 = vst [vmem:[%s165_s8 + $0x5c] sm:$0xf] %v951_v15 }
  0x24 PF: > { %p953_p7 = scmp.ge.s32.totalorder %s1229_s18, 1  ;;  %p253_p8 = scmp.lt.s32.totalorder %s1229_s18, 7 }
  0x26   : > { %p254_p9 = pnand %p953_p7, %p253_p8 }
  0x27   : > { %s260_s9 = sand.u32 (!%p254_p9), 1, %s1205_s12   ;;  %s304_s10 = smul.u32 (!%p254_p9), 48, %s1213_s14 }
  0x28   : > { %257 = sbr.rel (%p254_p9) target bundleno = 346 (0x15a), region = 54  ;;  %s955_s21 = sshll.u32 (!%p254_p9), %s1217_s15, 3 }
  0x29   : > { %s1077_s11 = smul.u32 (!%p254_p9), 96, %s260_s9  ;;  %p305_p10 = scmp.lt.s32.totalorder (!%p254_p9), %s304_s10, 143 }
  0x2a   : > { %p314_p11 = scmp.lt.s32.totalorder (!%p254_p9), %s955_s21, 15  ;;  %p959_p12 = scmp.ne.s32.totalorder (!%p254_p9), %s1213_s14, 0 }
  0x2b   : > { %s1350_s5 = scalar_lea.vmem (!%p254_p9), [#allocation3], %s1077_s11 }
  0x2f   : > { %s1444_s10 = smov (!%p305_p10, %s304_s10), 143  ;;  %s1446_s21 = smov (!%p314_p11, %s955_s21), 15 }
  0x30   : > { %s954_s22 = sshll.u32 %s1444_s10, 2  ;;  %s956_s27 = sshll.u32 %s1446_s21, 3  ;;  %v1231_v16 = vmov (!%p959_p12), 0.0  }
  0x31   : > { %s1338_s26 = scalar_lea.vmem %s1428_s1, %s954_s22  ;;  %s1343_s30 = scalar_lea.vmem %s1429_s2, %s956_s27  ;;  %336 = vst [vmem:[#allocation2] sm:$0xff] (!%p959_p12), %v1231_v16  ;;  %337 = vst [vmem:[#allocation2 + $0x8] sm:$0xff] (!%p959_p12), %v1231_v16 }
  0x32   : > { %s1348_s15 = scalar_lea.vmem %s1430_s3, %s956_s27  ;;  %335 = sbr.rel (%p959_p12) target bundleno = 57 (0x39), region = 62  ;;  %338 = vst [vmem:[#allocation2 + $0x10] sm:$0xff] (!%p959_p12), %v1231_v16  ;;  %339 = vst [vmem:[#allocation2 + $0x18] sm:$0xff] (!%p959_p12), %v1231_v16 }
  0x33   : > { %340 = vst [vmem:[#allocation2 + $0x20] sm:$0xff] (!%p959_p12), %v1231_v16  ;;  %341 = vst [vmem:[#allocation2 + $0x28] sm:$0xff] (!%p959_p12), %v1231_v16 }
  0x34   : > { %342 = vst [vmem:[#allocation2 + $0x30] sm:$0xff] (!%p959_p12), %v1231_v16  ;;  %343 = vst [vmem:[#allocation2 + $0x38] sm:$0xff] (!%p959_p12), %v1231_v16 }
  0x39 PF: > { %v1135_v17 = vld [vmem:[%s1338_s26 + $0x40] sm:$0xff]   ;;  %v1138_v20 = vld [vmem:[%s1338_s26 + $0x48] sm:$0xff]   ;;  %v1141_v23 = vld [vmem:[%s1338_s26 + $0x50] sm:$0xff]   ;;  %p996_p13 = scmp.ne.s32.totalorder %s1213_s14, 2 }
  0x3a   : > { %v1136_v18 = vld [vmem:[%s1338_s26] sm:$0xff]   ;;  %999 = vmatprep.subr.bf16.mxu0 %v1135_v17  ;;  %v1139_v21 = vld [vmem:[%s1338_s26 + $0x8] sm:$0xff]   ;;  %v1142_v24 = vld [vmem:[%s1338_s26 + $0x10] sm:$0xff]  }
  0x3b   : > { %v1137_v19 = vld [vmem:[%s1338_s26 + $0x80] sm:$0xff]   ;;  %1000 = vmatpush3.bf16.msra.mxu0 %v1136_v18  ;;  %v1140_v22 = vld [vmem:[%s1338_s26 + $0x88] sm:$0xff]   ;;  %v1143_v25 = vld [vmem:[%s1338_s26 + $0x90] sm:$0xff]  }
  0x3c   : > { %1051 = vmatprep.subr.bf16.mxu1 %v1137_v19  ;;  %1001 = vmatprep.subr.bf16.mxu0 %v1138_v20  ;;  %v1144_v26 = vld [vmem:[%s1338_s26 + $0x58] sm:$0xff]   ;;  %v1147_v29 = vld [vmem:[%s1338_s26 + $0x60] sm:$0xff]   ;;  %v1150_v32 = vld [vmem:[%s1338_s26 + $0x68] sm:$0xff]  }
  0x3d   : > { %1052 = vmatpush3.bf16.msra.mxu1 %v1137_v19  ;;  %v1145_v27 = vld [vmem:[%s1338_s26 + $0x18] sm:$0xff]   ;;  %v1149_v30 = vld [vmem:[%s1338_s26 + $0xa0] sm:$0xff]   ;;  %v1152_v33 = vld [vmem:[%s1338_s26 + $0xa8] sm:$0xff]  }
  0x3e   : > { %1053 = vmatprep.subr.bf16.mxu1 %v1140_v22  ;;  %v1146_v28 = vld [vmem:[%s1338_s26 + $0x98] sm:$0xff]   ;;  %v1148_v31 = vld [vmem:[%s1338_s26 + $0x20] sm:$0xff]   ;;  %v1151_v34 = vld [vmem:[%s1338_s26 + $0x28] sm:$0xff]  }
  0x3f   : > { %1002 = vmatpush3.bf16.msra.mxu0 %v1139_v21  ;;  %v1153_v35 = vld [vmem:[%s1338_s26 + $0x70] sm:$0xff]   ;;  %v1156_v38 = vld [vmem:[%s1338_s26 + $0x78] sm:$0xff]   ;;  %v1159_v43 = vld [vmem:[%s1350_s5] ss:$12 sps:$4 sm:$0xff]  }
  0x40   : > { %1003 = vmatprep.subr.bf16.mxu0 %v1141_v23  ;;  %v1154_v36 = vld [vmem:[%s1338_s26 + $0x30] sm:$0xff]   ;;  %v1158_v39 = vld [vmem:[%s1338_s26 + $0xb8] sm:$0xff]   ;;  %v1163_v45 = vld [vmem:[%s1350_s5 + $0x20] ss:$12 sps:$4 sm:$0xff]  }
  0x41   : > { %1054 = vmatpush3.bf16.msra.mxu1 %v1140_v22  ;;  %v1155_v37 = vld [vmem:[%s1338_s26 + $0xb0] sm:$0xff]   ;;  %v1157_v42 = vld [vmem:[%s1338_s26 + $0x38] sm:$0xff]   ;;  %v344_v59 = vld [vmem:[#allocation2] sm:$0xff] }
  0x42   : > { %1055 = vmatprep.subr.bf16.mxu1 %v1143_v25  ;;  %v1161_v40 = vld [vmem:[%s1350_s5 + $0x4] ss:$12 sps:$4 sm:$0xff]   ;;  %v1162_v41 = vld [vmem:[%s1350_s5 + $0x8] ss:$12 sps:$4 sm:$0xff]   ;;  %v1172_v51 = vld [vmem:[%s1350_s5 + $0x4c] ss:$12 sps:$4 sm:$0xff]  }
  0x43   : > { %1004 = vmatpush3.bf16.msra.mxu0 %v1142_v24  ;;  %656 = vmatprep.mubr.bf16.mxu0 %v1161_v40  ;;  %v1164_v44 = vld [vmem:[%s1350_s5 + $0x1c] ss:$12 sps:$4 sm:$0xff]   ;;  %v1170_v46 = vld [vmem:[%s1350_s5 + $0x38] ss:$12 sps:$4 sm:$0xff]   ;;  %v1167_v48 = vld [vmem:[%s1350_s5 + $0x34] ss:$12 sps:$4 sm:$0xff]  }
  0x44   : > { %1005 = vmatprep.subr.bf16.mxu0 %v1144_v26  ;;  %1067 = vmatprep.mubr.bf16.mxu1 %v1162_v41  ;;  %v1166_v47 = vld [vmem:[%s1350_s5 + $0x18] ss:$12 sps:$4 sm:$0xff]   ;;  %v1171_v49 = vld [vmem:[%s1350_s5 + $0x50] ss:$12 sps:$4 sm:$0xff]   ;;  %v1174_v52 = vld [vmem:[%s1350_s5 + $0x48] ss:$12 sps:$4 sm:$0xff]  }
  0x45   : > { %1056 = vmatpush3.bf16.msra.mxu1 %v1143_v25  ;;  %v1169_v50 = vld [vmem:[%s1350_s5 + $0x30] ss:$12 sps:$4 sm:$0xff]   ;;  %v345_v0 = vld [vmem:[#allocation2 + $0x8] sm:$0xff]  ;;  %v348_v26 = vld [vmem:[#allocation2 + $0x20] sm:$0xff] }
  0x46   : > { %1057 = vmatprep.subr.bf16.mxu1 %v1146_v28  ;;  %v346_v10 = vld [vmem:[#allocation2 + $0x10] sm:$0xff]  ;;  %v347_v16 = vld [vmem:[#allocation2 + $0x18] sm:$0xff] }
  0x47   : > { %1006 = vmatpush3.bf16.msra.mxu0 %v1145_v27  ;;  %v351_v41 = vld [vmem:[#allocation2 + $0x38] sm:$0xff] }
  0x48   : > { %1007 = vmatprep.subr.bf16.mxu0 %v1147_v29  ;;  %v349_v29 = vld [vmem:[#allocation2 + $0x28] sm:$0xff] }
  0x49   : > { %1058 = vmatpush3.bf16.msra.mxu1 %v1146_v28 }
  0x4a   : > { %1059 = vmatprep.subr.bf16.mxu1 %v1149_v30 }
  0x4b   : > { %1008 = vmatpush3.bf16.msra.mxu0 %v1148_v31 }
  0x4c   : > { %1009 = vmatprep.subr.bf16.mxu0 %v1150_v32 }
  0x4d   : > { %1060 = vmatpush3.bf16.msra.mxu1 %v1149_v30 }
  0x4e   : > { %1061 = vmatprep.subr.bf16.mxu1 %v1152_v33 }
  0x4f   : > { %1010 = vmatpush3.bf16.msra.mxu0 %v1151_v34 }
  0x50   : > { %1011 = vmatprep.subr.bf16.mxu0 %v1153_v35 }
  0x51   : > { %1062 = vmatpush3.bf16.msra.mxu1 %v1152_v33 }
  0x52   : > { %1063 = vmatprep.subr.bf16.mxu1 %v1155_v37 }
  0x53   : > { %1012 = vmatpush3.bf16.msra.mxu0 %v1154_v36 }
  0x54   : > { %1013 = vmatprep.subr.bf16.mxu0 %v1156_v38 }
  0x55   : > { %1064 = vmatpush3.bf16.msra.mxu1 %v1155_v37  ;;  %v350_v37 = vld [vmem:[#allocation2 + $0x30] sm:$0xff] }
  0x56   : > { %1065 = vmatprep.subr.bf16.mxu1 %v1158_v39 }
  0x57   : > { %1014 = vmatpush3.bf16.msra.mxu0 %v1157_v42 }
  0x59   : > { %1066 = vmatpush3.bf16.msra.mxu1 %v1158_v39 }
  0x5a   : > { %657 = vmatmul.mubr.bf16.vlgmr.msra.gmra.mrb[0].mxu0 %v1159_v43 }
  0x5b   : > { %664 = vmatprep.mubr.bf16.mxu0 %v1164_v44 }
  0x5c   : > { %1068 = vmatmul.mubr.bf16.vlgmr.msra.gmra.mrb[0].mxu1 %v1163_v45 }
  0x5d   : > { %1071 = vmatprep.mubr.bf16.mxu1 %v1170_v46  ;;  %v782_v46 = vld [vmem:[%s1343_s30] sm:$0xff] (!%p996_p13) }
  0x62   : > { %665 = vmatmul.mubr.bf16.gmra.mrb[4].mxu0 %v1166_v47 }
  0x63   : > { %672 = vmatprep.mubr.bf16.mxu0 %v1167_v48 }
  0x64   : > { %1072 = vmatmul.mubr.bf16.gmra.mrb[4].mxu1 %v1171_v49  ;;  %v783_v49 = vld [vmem:[%s1343_s30 + $0x8] sm:$0xff] (!%p996_p13) }
  0x6a   : > { %673 = vmatmul.mubr.bf16.gmra.mrb[8].mxu0 %v1169_v50 }
  0x6b   : > { %680 = vmatprep.mubr.bf16.mxu0 %v1172_v51  ;;  %v784_v51 = vld [vmem:[%s1343_s30 + $0x10] sm:$0xff] (!%p996_p13) }
  0x72   : > { %681 = vmatmul.mubr.bf16.gmra.mrb[12].mxu0 %v1174_v52 }
 0x12d   : > { %v1015_v53 = vpop.f32.mrb[0].mxu0 }
 0x12e   : > { %v1016_v54 = vpop.f32.mrb[1].mxu0 }
 0x12f   : > { %v1017_v55 = vadd.f32 %v1016_v54, %v1015_v53  ;;  %v1018_v56 = vpop.f32.mrb[2].mxu0  ;;  %v1069_v57 = vpop.f32.mrb[0].mxu1 }
 0x130   : > { %v1019_v58 = vpop.f32.mrb[3].mxu0  ;;  %v723_v60 = vpop.f32.mrb[1].mxu1 }
 0x131   : > { %v1020_v61 = vadd.f32 %v1019_v58, %v1018_v56  ;;  %v724_v62 = vadd.f32 %v1017_v55, %v723_v60  ;;  %v1070_v63 = vpop.f32.mrb[2].mxu1  ;;  %v785_v55 = vld [vmem:[%s1343_s30 + $0x18] sm:$0xff] (!%p996_p13)  ;;  %v786_v58 = vld [vmem:[%s1343_s30 + $0x20] sm:$0xff] (!%p996_p13)  ;;  %v787_v60 = vld [vmem:[%s1343_s30 + $0x28] sm:$0xff] (!%p996_p13) }
 0x132   : > { %v726_v1 = vpop.f32.mrb[3].mxu1 }
 0x133   : > { %v754_v2 = vadd.f32 %v724_v62, %v344_v59  ;;  %v727_v3 = vadd.f32 %v1020_v61, %v726_v1 }
 0x135   : > { %762 = vst [vmem:[#allocation2] sm:$0xff] %v754_v2  ;;  %v755_v4 = vadd.f32 %v727_v3, %v345_v0  ;;  %v1021_v5 = vpop.f32.mrb[4].mxu0  ;;  %v788_v0 = vld [vmem:[%s1343_s30 + $0x30] sm:$0xff] (!%p996_p13)  ;;  %v789_v3 = vld [vmem:[%s1343_s30 + $0x38] sm:$0xff] (!%p996_p13) }
 0x136   : > { %v1022_v6 = vpop.f32.mrb[5].mxu0 }
 0x137   : > { %763 = vst [vmem:[#allocation2 + $0x8] sm:$0xff] %v755_v4  ;;  %v1023_v7 = vadd.f32 %v1022_v6, %v1021_v5  ;;  %v1024_v8 = vpop.f32.mrb[6].mxu0  ;;  %v1073_v9 = vpop.f32.mrb[4].mxu1 }
 0x138   : > { %v1025_v11 = vpop.f32.mrb[7].mxu0  ;;  %v739_v12 = vpop.f32.mrb[5].mxu1 }
 0x139   : > { %v732_v13 = vadd.f32 %v1069_v57, %v1023_v7  ;;  %v1026_v14 = vadd.f32 %v1025_v11, %v1024_v8  ;;  %v1074_v15 = vpop.f32.mrb[6].mxu1 }
 0x13a   : > { %v742_v17 = vpop.f32.mrb[7].mxu1 }
 0x13b   : > { %v756_v18 = vadd.f32 %v732_v13, %v346_v10  ;;  %v735_v19 = vadd.f32 %v1070_v63, %v1026_v14 }
 0x13c   : > { %v774_v45 = vld [vmem:[#allocation2] sm:$0xff] (!%p996_p13) }
 0x13d   : > { %764 = vst [vmem:[#allocation2 + $0x10] sm:$0xff] %v756_v18  ;;  %v757_v20 = vadd.f32 %v735_v19, %v347_v16  ;;  %v1027_v21 = vpop.f32.mrb[8].mxu0  ;;  %v790_v48 = vadd.f32 (!%p996_p13), %v782_v46, %v774_v45 }
 0x13e   : > { %v1028_v22 = vpop.f32.mrb[9].mxu0  ;;  %v775_v47 = vld [vmem:[#allocation2 + $0x8] sm:$0xff] (!%p996_p13) }
 0x13f   : > { %765 = vst [vmem:[#allocation2 + $0x18] sm:$0xff] %v757_v20  ;;  %v1029_v23 = vadd.f32 %v1028_v22, %v1027_v21  ;;  %v1030_v24 = vpop.f32.mrb[10].mxu0  ;;  %v791_v52 = vadd.f32 (!%p996_p13), %v783_v49, %v775_v47  ;;  %798 = vst [vmem:[%s1348_s15] sm:$0xff] (!%p996_p13), %v790_v48 }
 0x140   : > { %v1031_v25 = vpop.f32.mrb[11].mxu0 }
 0x141   : > { %v1032_v27 = vadd.f32 %v1031_v25, %v1030_v24  ;;  %v740_v28 = vadd.f32 %v1029_v23, %v739_v12  ;;  %799 = vst [vmem:[%s1348_s15 + $0x8] sm:$0xff] (!%p996_p13), %v791_v52 }
 0x143   : > { %v758_v30 = vadd.f32 %v740_v28, %v348_v26  ;;  %v743_v31 = vadd.f32 %v1032_v27, %v742_v17 }
 0x144   : > { %v776_v50 = vld [vmem:[#allocation2 + $0x10] sm:$0xff] (!%p996_p13) }
 0x145   : > { %766 = vst [vmem:[#allocation2 + $0x20] sm:$0xff] %v758_v30  ;;  %v759_v32 = vadd.f32 %v743_v31, %v349_v29  ;;  %v1033_v33 = vpop.f32.mrb[12].mxu0  ;;  %v792_v53 = vadd.f32 (!%p996_p13), %v784_v51, %v776_v50 }
 0x146   : > { %v1034_v34 = vpop.f32.mrb[13].mxu0  ;;  %v777_v54 = vld [vmem:[#allocation2 + $0x18] sm:$0xff] (!%p996_p13) }
 0x147   : > { %767 = vst [vmem:[#allocation2 + $0x28] sm:$0xff] %v759_v32  ;;  %v1035_v35 = vadd.f32 %v1034_v34, %v1033_v33  ;;  %v1036_v36 = vpop.f32.mrb[14].mxu0  ;;  %v793_v57 = vadd.f32 (!%p996_p13), %v785_v55, %v777_v54  ;;  %800 = vst [vmem:[%s1348_s15 + $0x10] sm:$0xff] (!%p996_p13), %v792_v53 }
 0x148   : > { %v1037_v38 = vpop.f32.mrb[15].mxu0 }
 0x149   : > { %v748_v39 = vadd.f32 %v1073_v9, %v1035_v35  ;;  %v1038_v40 = vadd.f32 %v1037_v38, %v1036_v36  ;;  %773 = sbr.rel (%p996_p13) target bundleno = 346 (0x15a), region = 66  ;;  %801 = vst [vmem:[%s1348_s15 + $0x18] sm:$0xff] (!%p996_p13), %v793_v57 }
 0x14b   : > { %v760_v42 = vadd.f32 %v748_v39, %v350_v37  ;;  %v751_v43 = vadd.f32 %v1074_v15, %v1038_v40 }
 0x14c   : > { %v778_v56 = vld [vmem:[#allocation2 + $0x20] sm:$0xff] (!%p996_p13) }
 0x14d   : > { %768 = vst [vmem:[#allocation2 + $0x30] sm:$0xff] %v760_v42  ;;  %v761_v44 = vadd.f32 %v751_v43, %v351_v41  ;;  %v794_v61 = vadd.f32 (!%p996_p13), %v786_v58, %v778_v56 }
 0x14e   : > { %v779_v59 = vld [vmem:[#allocation2 + $0x28] sm:$0xff] (!%p996_p13) }
 0x14f   : > { %769 = vst [vmem:[#allocation2 + $0x38] sm:$0xff] %v761_v44  ;;  %v795_v62 = vadd.f32 (!%p996_p13), %v787_v60, %v779_v59  ;;  %802 = vst [vmem:[%s1348_s15 + $0x20] sm:$0xff] (!%p996_p13), %v794_v61 }
 0x151   : > { %803 = vst [vmem:[%s1348_s15 + $0x28] sm:$0xff] %v795_v62 }
 0x154   : > { %v780_v63 = vld [vmem:[#allocation2 + $0x30] sm:$0xff] }
 0x155   : > { %v796_v2 = vadd.f32 %v788_v0, %v780_v63 }
 0x156   : > { %v781_v1 = vld [vmem:[#allocation2 + $0x38] sm:$0xff] }
 0x157   : > { %v797_v4 = vadd.f32 %v789_v3, %v781_v1  ;;  %804 = vst [vmem:[%s1348_s15 + $0x30] sm:$0xff] %v796_v2 }
 0x159   : > { %805 = vst [vmem:[%s1348_s15 + $0x38] sm:$0xff] %v797_v4 }
 0x15a PF: > { %s13_s18 = sadd.s32 1, %s1229_s18   ;;  %s1431_s12 = smov %s1209_s13 }
 0x15b   : > { %p10_p0 = scmp.ge.s32.totalorder %s13_s18, 8   ;;  %s1432_s13 = smov %s1303_s25 }
 0x15c   : > { %s1433_s14 = smov %s1221_s16  ;;  %s1434_s15 = smov %s1225_s17 }
 0x15d   : > { %s1435_s16 = smov %s1438_s19  ;;  %s1436_s17 = smov %s1442_s20 }
 0x15e   :  { %12 = sbr.rel (!%p10_p0) target bundleno = 4 (0x4), region = 113 }

</bundles_post_ra>
